<compile_context>
chip_gen: v7x
topology: tpu7x:2x2x1
jax: 0.10.0
libtpu: 0.0.40
codegen_flags: <defaults>
</compile_context>

<pallas_src>
import math
from typing import List, NamedTuple, Tuple

import numpy as np
import jax
import jax.numpy as jnp
from jax import lax
from jax.experimental import pallas as pl
from jax.experimental.pallas import tpu as pltpu


# ----------------------------- config ---------------------------------------


class ConvLayerCfg(NamedTuple):
    in_channels: int
    out_channels: int
    kernel_size: int
    stride: int
    pool: bool


class FcLayerCfg(NamedTuple):
    hdim: int


class Config(NamedTuple):
    conv_layers: Tuple[ConvLayerCfg, ...]
    fc_layers: Tuple[FcLayerCfg, ...]
    hdim: int
    activation: str = "relu"


# ----------------------------- static geometry ------------------------------


class StageGeom(NamedTuple):
    ic: int
    oc: int
    k: int
    pool: bool
    in_h: int          # per-batch input rows (always compact)
    in_w: int          # logical input width (pooled positions)
    phys_cols: int     # physical column count of the input activation slab
    col_stride: int    # 2 if the previous stage was pooled (lazy cols), else 1
    conv_h: int
    conv_w: int
    out_h: int
    out_w: int
    out_phys_cols: int  # physical column count of this stage's output slab


def compute_geometry(config: Config, input_hw: Tuple[int, int]) -> List[StageGeom]:
    h, w = input_hw
    phys_cols = w * config.conv_layers[0].in_channels
    col_stride = 1
    in_w = w
    geoms: List[StageGeom] = []
    for cl in config.conv_layers:
        assert cl.stride == 1  # TODO(synk): stride > 1 unsupported
        k = cl.kernel_size
        conv_h = h - k + 1
        conv_w = in_w - k + 1
        if cl.pool:
            assert conv_h % 2 == 0 and conv_w % 2 == 0
            out_h, out_w = conv_h // 2, conv_w // 2
            out_phys_cols = (conv_w - 1) * cl.out_channels  # lazy (uncompacted) cols
            next_col_stride = 2
        else:
            out_h, out_w = conv_h, conv_w
            out_phys_cols = conv_w * cl.out_channels
            next_col_stride = 1
        geoms.append(StageGeom(cl.in_channels, cl.out_channels, k, cl.pool,
                               h, in_w, phys_cols, col_stride,
                               conv_h, conv_w, out_h, out_w, out_phys_cols))
        h, in_w = out_h, out_w
        phys_cols, col_stride = out_phys_cols, next_col_stride
    # the module's FC indim == last out_channels requires a 1x1 final map
    assert h == 1 and in_w == 1
    return geoms


# ----------------------------- params ---------------------------------------


def init_convolutional_body(key, config, dtype=jnp.float32):
    """PyTorch-layout parameter init (Conv2d: (OC,IC,KH,KW); Linear: (out,in))."""
    conv_params = []
    for cl in config.conv_layers:
        key, kw_, kb_ = jax.random.split(key, 3)
        fan_in = cl.in_channels * cl.kernel_size * cl.kernel_size
        bound = 1.0 / math.sqrt(fan_in)
        w = jax.random.uniform(
            kw_,
            (cl.out_channels, cl.in_channels, cl.kernel_size, cl.kernel_size),
            dtype, -bound, bound,
        )
        b = jax.random.uniform(kb_, (cl.out_channels,), dtype, -bound, bound)
        conv_params.append((w, b))

    fc_params = []
    indim = config.conv_layers[-1].out_channels
    dims = [fcl.hdim for fcl in config.fc_layers[:-1]] + [config.hdim]
    for hdim in dims:
        key, kw_, kb_ = jax.random.split(key, 3)
        bound = 1.0 / math.sqrt(indim)
        w = jax.random.uniform(kw_, (hdim, indim), dtype, -bound, bound)
        b = jax.random.uniform(kb_, (hdim,), dtype, -bound, bound)
        fc_params.append((w, b))
        indim = hdim
    return conv_params, fc_params


def prepare_pallas_params(config, conv_params, fc_params, input_hw):
    """One-time transform of all weights into MXU-direct, fused-kernel layouts.

    Per conv stage: a row-Toeplitz weight tensor T of shape
    (k, phys_cols, conv_w*oc), a bias tiled over the output column blocks, and
    (if pooled) a tiny 0/1 row-selection matrix S.  FC weights are transposed
    to (in, out).  Columns discarded by the previous stage's pooling are kept
    "lazily" in the activation and zeroed here in T (free absorption).
    """
    geoms = compute_geometry(config, input_hw)
    params: List[jnp.ndarray] = []
    for g, (w, b) in zip(geoms, conv_params):
        w_np = np.asarray(w, np.float32)   # (oc, ic, k, k)
        b_np = np.asarray(b, np.float32)
        T = np.zeros((g.k, g.phys_cols, g.conv_w * g.oc), np.float32)
        for ki in range(g.k):
            for ow in range(g.conv_w):
                for kj in range(g.k):
                    w_in = ow + kj                       # logical input col
                    r0 = g.col_stride * w_in * g.ic      # physical col of (w_in, c=0)
                    T[ki, r0:r0 + g.ic, ow * g.oc:(ow + 1) * g.oc] = \
                        w_np[:, :, ki, kj].T
        params.append(jnp.asarray(T))                                   # (k, phys_cols, conv_w*oc)
        blocks = g.out_phys_cols // g.oc
        params.append(jnp.asarray(np.tile(b_np, blocks).reshape(1, -1)))  # (1, out_phys_cols)
        if g.pool:
            S = np.zeros((g.out_h, g.conv_h - 1), np.float32)
            S[np.arange(g.out_h), 2 * np.arange(g.out_h)] = 1.0
            params.append(jnp.asarray(S))
    for (w, b) in fc_params:
        params.append(jnp.asarray(np.asarray(w, np.float32).T))          # (in, out)
        params.append(jnp.asarray(np.asarray(b, np.float32).reshape(1, -1)))
    return tuple(params)


# ----------------------------- fused kernel ----------------------------------


def _vmem_spec():
    # Whole-array block pinned to VMEM (single invocation, no grid).
    return pl.BlockSpec(memory_space=pltpu.MemorySpace.VMEM)


def _make_fused_kernel(geoms, n_fc, n_batch, in_h0):
    """Whole forward in one kernel.  Only rock-solid Mosaic ops are used:
    full/sliced VMEM ref loads, static unit-stride 2-D value slices, 2-D f32
    jnp.dot, elementwise max/add with (1, W) bias broadcast, static ref stores.
    """
    def kernel(*refs):
        x_ref = refs[0]
        o_ref = refs[-1]
        prm = refs[1:-1]
        xv = x_ref[...]                                 # (N*H0, W0*C0), VMEM resident
        for n in range(n_batch):                        # static unroll (tiny batch)
            a = xv[n * in_h0:(n + 1) * in_h0, :]        # (H0, W0*C0)
            pi = 0
            for g in geoms:
                t_ref = prm[pi]
                b_ref = prm[pi + 1]
                pi += 2
                s_ref = None
                if g.pool:
                    s_ref = prm[pi]
                    pi += 1
                # conv as row-Toeplitz GEMM: one MXU pass per kernel row
                z = None
                for ki in range(g.k):
                    lhs = a[ki:ki + g.conv_h, :]        # contiguous row window
                    rhs = t_ref[ki]                     # (phys_cols, conv_w*oc)
                    zz = jnp.dot(lhs, rhs, preferred_element_type=jnp.float32)
                    z = zz if z is None else z + zz
                if g.pool:
                    # ReLU(maxpool(ReLU(conv+b))) == ReLU(maxpool(conv)+b)
                    # col-pair max (valid results land on even oc-blocks; the
                    # stale odd blocks are zeroed out in the NEXT stage's T)
                    z = jnp.maximum(z[:, :-g.oc], z[:, g.oc:])
                    # row-pair max (valid results on even rows)
                    z = jnp.maximum(z[:-1, :], z[1:, :])
                    # compact rows with a tiny 0/1 selection matmul
                    z = jnp.dot(s_ref[...], z, preferred_element_type=jnp.float32)
                a = jnp.maximum(z + b_ref[...], 0.0)
            # final spatial map is 1x1 -> a is (1, oc_last): flatten == identity
            for _ in range(n_fc):
                w_ref = prm[pi]
                b_ref = prm[pi + 1]
                pi += 2
                a = jnp.maximum(
                    jnp.dot(a, w_ref[...], preferred_element_type=jnp.float32)
                    + b_ref[...],
                    0.0,
                )
            o_ref[n:n + 1, :] = a.astype(o_ref.dtype)
    return kernel


# ----------------------------- forward ---------------------------------------


def make_forward(config: Config, input_hw: Tuple[int, int]):
    assert config.activation == "relu"  # TODO(synk): other activations
    geoms = compute_geometry(config, input_hw)
    n_fc = len(config.fc_layers)
    fc_dims = [fcl.hdim for fcl in config.fc_layers[:-1]] + [config.hdim]
    h0, w0 = input_hw
    c0 = config.conv_layers[0].in_channels

    @jax.jit
    def forward(x, params_flat):
        if x.ndim < 4:
            x = x[None]                    # matches x.unsqueeze(0)
        n = x.shape[0]
        assert x.shape[1:] == (h0, w0, c0)
        # free, contiguous reshape: rows = (n, h), cols = (w, c)
        x2d = x.reshape(n * h0, w0 * c0)

        # advisory cost estimate for XLA's scheduler
        flops = 0
        for g in geoms:
            flops += n * g.k * 2 * g.conv_h * g.phys_cols * g.conv_w * g.oc
            if g.pool:
                flops += n * 2 * g.out_h * (g.conv_h - 1) * g.out_phys_cols
        indim = geoms[-1].oc
        for hdim in fc_dims:
            flops += n * 2 * indim * hdim
            indim = hdim
        bytes_acc = 4 * (x2d.size + sum(int(p.size) for p in params_flat)
                         + n * config.hdim)

        kernel = _make_fused_kernel(geoms, n_fc, n, h0)
        out = pl.pallas_call(
            kernel,
            out_shape=jax.ShapeDtypeStruct((n, config.hdim), x.dtype),
            in_specs=[_vmem_spec()] * (1 + len(params_flat)),
            out_specs=_vmem_spec(),
            cost_estimate=pl.CostEstimate(
                flops=int(flops), transcendentals=0,
                bytes_accessed=int(bytes_acc)),
        )(x2d, *params_flat)
        # per-FC .squeeze() in the module is a no-op at these shapes
        return jnp.squeeze(out)

    return forward


# ----------------------------- pure-JAX reference ----------------------------


def reference_forward(x, config, conv_params, fc_params):
    if x.ndim < 4:
        x = x[None]
    x = jnp.transpose(x, (0, 3, 1, 2))  # NHWC -> NCHW (transpose(1,3).transpose(2,3))
    for cl, (w, b) in zip(config.conv_layers, conv_params):
        x = lax.conv_general_dilated(
            x, w, window_strides=(cl.stride, cl.stride), padding="VALID",
            dimension_numbers=("NCHW", "OIHW", "NCHW"))
        x = jnp.maximum(x + b[None, :, None, None], 0.0)
        if cl.pool:
            x = lax.reduce_window(x, -jnp.inf, lax.max,
                                  (1, 1, 2, 2), (1, 1, 2, 2), "VALID")
            x = jnp.maximum(x, 0.0)
    x = x.reshape(x.shape[0], -1)
    for (w, b) in fc_params:
        x = jnp.maximum(x @ w.T + b, 0.0)
        x = jnp.squeeze(x)
    return x


# ----------------------------- main ------------------------------------------


if __name__ == "__main__":
    config = Config(
        conv_layers=(
            ConvLayerCfg(4, 8, 5, 1, True),     # 16x16 -> 12x12 -> pool -> 6x6
            ConvLayerCfg(8, 16, 3, 1, True),    # 6x6  -> 4x4  -> pool -> 2x2
            ConvLayerCfg(16, 32, 2, 1, False),  # 2x2  -> 1x1
        ),
        fc_layers=(FcLayerCfg(64), FcLayerCfg(32)),  # [:-1] -> one hidden FC(64)
        hdim=32,
        activation="relu",
    )

    key = jax.random.PRNGKey(0)
    key, kx = jax.random.split(key)
    x = jax.random.normal(kx, (2, 16, 16, 4), jnp.float32)  # NHWC input

    conv_params, fc_params = init_convolutional_body(key, config)
    params_flat = prepare_pallas_params(config, conv_params, fc_params, (16, 16))

    forward = make_forward(config, (16, 16))
    out = jax.block_until_ready(forward(x, params_flat))

    ref = reference_forward(x, config, conv_params, fc_params)
    assert out.shape == (2, config.hdim), out.shape
    assert jnp.allclose(out, ref, atol=1e-4, rtol=1e-4), float(
        jnp.max(jnp.abs(out - ref)))

    print("KERNEL_OK")
</pallas_src>

<mosaic_0001>
module attributes {stable_mosaic.version = 11 : i64} {
  func.func @kernel(%arg0: memref<32x64xf32, #tpu.memory_space<vmem>>, %arg1: memref<5x64x96xf32, #tpu.memory_space<vmem>>, %arg2: memref<1x88xf32, #tpu.memory_space<vmem>>, %arg3: memref<6x11xf32, #tpu.memory_space<vmem>>, %arg4: memref<3x88x64xf32, #tpu.memory_space<vmem>>, %arg5: memref<1x48xf32, #tpu.memory_space<vmem>>, %arg6: memref<2x3xf32, #tpu.memory_space<vmem>>, %arg7: memref<2x48x32xf32, #tpu.memory_space<vmem>>, %arg8: memref<1x32xf32, #tpu.memory_space<vmem>>, %arg9: memref<32x64xf32, #tpu.memory_space<vmem>>, %arg10: memref<1x64xf32, #tpu.memory_space<vmem>>, %arg11: memref<64x32xf32, #tpu.memory_space<vmem>>, %arg12: memref<1x32xf32, #tpu.memory_space<vmem>>, %arg13: memref<2x32xf32, #tpu.memory_space<vmem>>) attributes {dimension_semantics = [], scalar_prefetch = 0 : i64, scratch_operands = 0 : i64, tpu.core_type = #tpu.core_type<tc>} {
    %c0 = arith.constant 0 : index
    %c0_0 = arith.constant 0 : index
    %0 = vector.load %arg0[%c0, %c0_0] : memref<32x64xf32, #tpu.memory_space<vmem>>, vector<32x64xf32>
    %1 = vector.extract_strided_slice %0 {offsets = [0, 0], sizes = [16, 64], strides = [1, 1]} : vector<32x64xf32> to vector<16x64xf32>
    %2 = vector.extract_strided_slice %1 {offsets = [0, 0], sizes = [12, 64], strides = [1, 1]} : vector<16x64xf32> to vector<12x64xf32>
    %c0_1 = arith.constant 0 : index
    %c0_2 = arith.constant 0 : index
    %c0_3 = arith.constant 0 : index
    %3 = vector.load %arg1[%c0_1, %c0_2, %c0_3] : memref<5x64x96xf32, #tpu.memory_space<vmem>>, vector<1x64x96xf32>
    %4 = vector.shape_cast %3 : vector<1x64x96xf32> to vector<64x96xf32>
    %cst = arith.constant dense<0.000000e+00> : vector<12x96xf32>
    %5 = tpu.matmul %2, %4, %cst {dimension_numbers = #tpu.dot_dimension_numbers<[1], [0], [0], [1], [0, 0, 1, 1], [], []>} : vector<12x64xf32>, vector<64x96xf32>, vector<12x96xf32> -> vector<12x96xf32>
    %6 = vector.extract_strided_slice %1 {offsets = [1, 0], sizes = [12, 64], strides = [1, 1]} : vector<16x64xf32> to vector<12x64xf32>
    %c1 = arith.constant 1 : index
    %c0_4 = arith.constant 0 : index
    %c0_5 = arith.constant 0 : index
    %7 = vector.load %arg1[%c1, %c0_4, %c0_5] : memref<5x64x96xf32, #tpu.memory_space<vmem>>, vector<1x64x96xf32>
    %8 = vector.shape_cast %7 : vector<1x64x96xf32> to vector<64x96xf32>
    %cst_6 = arith.constant dense<0.000000e+00> : vector<12x96xf32>
    %9 = tpu.matmul %6, %8, %cst_6 {dimension_numbers = #tpu.dot_dimension_numbers<[1], [0], [0], [1], [0, 0, 1, 1], [], []>} : vector<12x64xf32>, vector<64x96xf32>, vector<12x96xf32> -> vector<12x96xf32>
    %10 = arith.addf %5, %9 : vector<12x96xf32>
    %11 = vector.extract_strided_slice %1 {offsets = [2, 0], sizes = [12, 64], strides = [1, 1]} : vector<16x64xf32> to vector<12x64xf32>
    %c2 = arith.constant 2 : index
    %c0_7 = arith.constant 0 : index
    %c0_8 = arith.constant 0 : index
    %12 = vector.load %arg1[%c2, %c0_7, %c0_8] : memref<5x64x96xf32, #tpu.memory_space<vmem>>, vector<1x64x96xf32>
    %13 = vector.shape_cast %12 : vector<1x64x96xf32> to vector<64x96xf32>
    %cst_9 = arith.constant dense<0.000000e+00> : vector<12x96xf32>
    %14 = tpu.matmul %11, %13, %cst_9 {dimension_numbers = #tpu.dot_dimension_numbers<[1], [0], [0], [1], [0, 0, 1, 1], [], []>} : vector<12x64xf32>, vector<64x96xf32>, vector<12x96xf32> -> vector<12x96xf32>
    %15 = arith.addf %10, %14 : vector<12x96xf32>
    %16 = vector.extract_strided_slice %1 {offsets = [3, 0], sizes = [12, 64], strides = [1, 1]} : vector<16x64xf32> to vector<12x64xf32>
    %c3 = arith.constant 3 : index
    %c0_10 = arith.constant 0 : index
    %c0_11 = arith.constant 0 : index
    %17 = vector.load %arg1[%c3, %c0_10, %c0_11] : memref<5x64x96xf32, #tpu.memory_space<vmem>>, vector<1x64x96xf32>
    %18 = vector.shape_cast %17 : vector<1x64x96xf32> to vector<64x96xf32>
    %cst_12 = arith.constant dense<0.000000e+00> : vector<12x96xf32>
    %19 = tpu.matmul %16, %18, %cst_12 {dimension_numbers = #tpu.dot_dimension_numbers<[1], [0], [0], [1], [0, 0, 1, 1], [], []>} : vector<12x64xf32>, vector<64x96xf32>, vector<12x96xf32> -> vector<12x96xf32>
    %20 = arith.addf %15, %19 : vector<12x96xf32>
    %21 = vector.extract_strided_slice %1 {offsets = [4, 0], sizes = [12, 64], strides = [1, 1]} : vector<16x64xf32> to vector<12x64xf32>
    %c4 = arith.constant 4 : index
    %c0_13 = arith.constant 0 : index
    %c0_14 = arith.constant 0 : index
    %22 = vector.load %arg1[%c4, %c0_13, %c0_14] : memref<5x64x96xf32, #tpu.memory_space<vmem>>, vector<1x64x96xf32>
    %23 = vector.shape_cast %22 : vector<1x64x96xf32> to vector<64x96xf32>
    %cst_15 = arith.constant dense<0.000000e+00> : vector<12x96xf32>
    %24 = tpu.matmul %21, %23, %cst_15 {dimension_numbers = #tpu.dot_dimension_numbers<[1], [0], [0], [1], [0, 0, 1, 1], [], []>} : vector<12x64xf32>, vector<64x96xf32>, vector<12x96xf32> -> vector<12x96xf32>
    %25 = arith.addf %20, %24 : vector<12x96xf32>
    %26 = vector.extract_strided_slice %25 {offsets = [0, 0], sizes = [12, 88], strides = [1, 1]} : vector<12x96xf32> to vector<12x88xf32>
    %27 = vector.extract_strided_slice %25 {offsets = [0, 8], sizes = [12, 88], strides = [1, 1]} : vector<12x96xf32> to vector<12x88xf32>
    %28 = arith.maximumf %26, %27 : vector<12x88xf32>
    %29 = vector.extract_strided_slice %28 {offsets = [0, 0], sizes = [11, 88], strides = [1, 1]} : vector<12x88xf32> to vector<11x88xf32>
    %30 = vector.extract_strided_slice %28 {offsets = [1, 0], sizes = [11, 88], strides = [1, 1]} : vector<12x88xf32> to vector<11x88xf32>
    %31 = arith.maximumf %29, %30 : vector<11x88xf32>
    %c0_16 = arith.constant 0 : index
    %c0_17 = arith.constant 0 : index
    %32 = vector.load %arg3[%c0_16, %c0_17] : memref<6x11xf32, #tpu.memory_space<vmem>>, vector<6x11xf32>
    %cst_18 = arith.constant dense<0.000000e+00> : vector<6x88xf32>
    %33 = tpu.matmul %32, %31, %cst_18 {dimension_numbers = #tpu.dot_dimension_numbers<[1], [0], [0], [1], [0, 0, 1, 1], [], []>} : vector<6x11xf32>, vector<11x88xf32>, vector<6x88xf32> -> vector<6x88xf32>
    %c0_19 = arith.constant 0 : index
    %c0_20 = arith.constant 0 : index
    %34 = vector.load %arg2[%c0_19, %c0_20] : memref<1x88xf32, #tpu.memory_space<vmem>>, vector<1x88xf32>
    %35 = vector.broadcast %34 : vector<1x88xf32> to vector<6x88xf32>
    %36 = arith.addf %33, %35 : vector<6x88xf32>
    %cst_21 = arith.constant 0.000000e+00 : f32
    %37 = vector.broadcast %cst_21 : f32 to vector<6x88xf32>
    %38 = arith.maximumf %36, %37 : vector<6x88xf32>
    %39 = vector.extract_strided_slice %38 {offsets = [0, 0], sizes = [4, 88], strides = [1, 1]} : vector<6x88xf32> to vector<4x88xf32>
    %c0_22 = arith.constant 0 : index
    %c0_23 = arith.constant 0 : index
    %c0_24 = arith.constant 0 : index
    %40 = vector.load %arg4[%c0_22, %c0_23, %c0_24] : memref<3x88x64xf32, #tpu.memory_space<vmem>>, vector<1x88x64xf32>
    %41 = vector.shape_cast %40 : vector<1x88x64xf32> to vector<88x64xf32>
    %cst_25 = arith.constant dense<0.000000e+00> : vector<4x64xf32>
    %42 = tpu.matmul %39, %41, %cst_25 {dimension_numbers = #tpu.dot_dimension_numbers<[1], [0], [0], [1], [0, 0, 1, 1], [], []>} : vector<4x88xf32>, vector<88x64xf32>, vector<4x64xf32> -> vector<4x64xf32>
    %43 = vector.extract_strided_slice %38 {offsets = [1, 0], sizes = [4, 88], strides = [1, 1]} : vector<6x88xf32> to vector<4x88xf32>
    %c1_26 = arith.constant 1 : index
    %c0_27 = arith.constant 0 : index
    %c0_28 = arith.constant 0 : index
    %44 = vector.load %arg4[%c1_26, %c0_27, %c0_28] : memref<3x88x64xf32, #tpu.memory_space<vmem>>, vector<1x88x64xf32>
    %45 = vector.shape_cast %44 : vector<1x88x64xf32> to vector<88x64xf32>
    %cst_29 = arith.constant dense<0.000000e+00> : vector<4x64xf32>
    %46 = tpu.matmul %43, %45, %cst_29 {dimension_numbers = #tpu.dot_dimension_numbers<[1], [0], [0], [1], [0, 0, 1, 1], [], []>} : vector<4x88xf32>, vector<88x64xf32>, vector<4x64xf32> -> vector<4x64xf32>
    %47 = arith.addf %42, %46 : vector<4x64xf32>
    %48 = vector.extract_strided_slice %38 {offsets = [2, 0], sizes = [4, 88], strides = [1, 1]} : vector<6x88xf32> to vector<4x88xf32>
    %c2_30 = arith.constant 2 : index
    %c0_31 = arith.constant 0 : index
    %c0_32 = arith.constant 0 : index
    %49 = vector.load %arg4[%c2_30, %c0_31, %c0_32] : memref<3x88x64xf32, #tpu.memory_space<vmem>>, vector<1x88x64xf32>
    %50 = vector.shape_cast %49 : vector<1x88x64xf32> to vector<88x64xf32>
    %cst_33 = arith.constant dense<0.000000e+00> : vector<4x64xf32>
    %51 = tpu.matmul %48, %50, %cst_33 {dimension_numbers = #tpu.dot_dimension_numbers<[1], [0], [0], [1], [0, 0, 1, 1], [], []>} : vector<4x88xf32>, vector<88x64xf32>, vector<4x64xf32> -> vector<4x64xf32>
    %52 = arith.addf %47, %51 : vector<4x64xf32>
    %53 = vector.extract_strided_slice %52 {offsets = [0, 0], sizes = [4, 48], strides = [1, 1]} : vector<4x64xf32> to vector<4x48xf32>
    %54 = vector.extract_strided_slice %52 {offsets = [0, 16], sizes = [4, 48], strides = [1, 1]} : vector<4x64xf32> to vector<4x48xf32>
    %55 = arith.maximumf %53, %54 : vector<4x48xf32>
    %56 = vector.extract_strided_slice %55 {offsets = [0, 0], sizes = [3, 48], strides = [1, 1]} : vector<4x48xf32> to vector<3x48xf32>
    %57 = vector.extract_strided_slice %55 {offsets = [1, 0], sizes = [3, 48], strides = [1, 1]} : vector<4x48xf32> to vector<3x48xf32>
    %58 = arith.maximumf %56, %57 : vector<3x48xf32>
    %c0_34 = arith.constant 0 : index
    %c0_35 = arith.constant 0 : index
    %59 = vector.load %arg6[%c0_34, %c0_35] : memref<2x3xf32, #tpu.memory_space<vmem>>, vector<2x3xf32>
    %cst_36 = arith.constant dense<0.000000e+00> : vector<2x48xf32>
    %60 = tpu.matmul %59, %58, %cst_36 {dimension_numbers = #tpu.dot_dimension_numbers<[1], [0], [0], [1], [0, 0, 1, 1], [], []>} : vector<2x3xf32>, vector<3x48xf32>, vector<2x48xf32> -> vector<2x48xf32>
    %c0_37 = arith.constant 0 : index
    %c0_38 = arith.constant 0 : index
    %61 = vector.load %arg5[%c0_37, %c0_38] : memref<1x48xf32, #tpu.memory_space<vmem>>, vector<1x48xf32>
    %62 = vector.broadcast %61 : vector<1x48xf32> to vector<2x48xf32>
    %63 = arith.addf %60, %62 : vector<2x48xf32>
    %cst_39 = arith.constant 0.000000e+00 : f32
    %64 = vector.broadcast %cst_39 : f32 to vector<2x48xf32>
    %65 = arith.maximumf %63, %64 : vector<2x48xf32>
    %66 = vector.extract_strided_slice %65 {offsets = [0, 0], sizes = [1, 48], strides = [1, 1]} : vector<2x48xf32> to vector<1x48xf32>
    %c0_40 = arith.constant 0 : index
    %c0_41 = arith.constant 0 : index
    %c0_42 = arith.constant 0 : index
    %67 = vector.load %arg7[%c0_40, %c0_41, %c0_42] : memref<2x48x32xf32, #tpu.memory_space<vmem>>, vector<1x48x32xf32>
    %68 = vector.shape_cast %67 : vector<1x48x32xf32> to vector<48x32xf32>
    %cst_43 = arith.constant dense<0.000000e+00> : vector<1x32xf32>
    %69 = tpu.matmul %66, %68, %cst_43 {dimension_numbers = #tpu.dot_dimension_numbers<[1], [0], [0], [1], [0, 0, 1, 1], [], []>} : vector<1x48xf32>, vector<48x32xf32>, vector<1x32xf32> -> vector<1x32xf32>
    %70 = vector.extract_strided_slice %65 {offsets = [1, 0], sizes = [1, 48], strides = [1, 1]} : vector<2x48xf32> to vector<1x48xf32>
    %c1_44 = arith.constant 1 : index
    %c0_45 = arith.constant 0 : index
    %c0_46 = arith.constant 0 : index
    %71 = vector.load %arg7[%c1_44, %c0_45, %c0_46] : memref<2x48x32xf32, #tpu.memory_space<vmem>>, vector<1x48x32xf32>
    %72 = vector.shape_cast %71 : vector<1x48x32xf32> to vector<48x32xf32>
    %cst_47 = arith.constant dense<0.000000e+00> : vector<1x32xf32>
    %73 = tpu.matmul %70, %72, %cst_47 {dimension_numbers = #tpu.dot_dimension_numbers<[1], [0], [0], [1], [0, 0, 1, 1], [], []>} : vector<1x48xf32>, vector<48x32xf32>, vector<1x32xf32> -> vector<1x32xf32>
    %74 = arith.addf %69, %73 : vector<1x32xf32>
    %c0_48 = arith.constant 0 : index
    %c0_49 = arith.constant 0 : index
    %75 = vector.load %arg8[%c0_48, %c0_49] : memref<1x32xf32, #tpu.memory_space<vmem>>, vector<1x32xf32>
    %76 = arith.addf %74, %75 : vector<1x32xf32>
    %cst_50 = arith.constant 0.000000e+00 : f32
    %77 = vector.broadcast %cst_50 : f32 to vector<1x32xf32>
    %78 = arith.maximumf %76, %77 : vector<1x32xf32>
    %c0_51 = arith.constant 0 : index
    %c0_52 = arith.constant 0 : index
    %79 = vector.load %arg9[%c0_51, %c0_52] : memref<32x64xf32, #tpu.memory_space<vmem>>, vector<32x64xf32>
    %cst_53 = arith.constant dense<0.000000e+00> : vector<1x64xf32>
    %80 = tpu.matmul %78, %79, %cst_53 {dimension_numbers = #tpu.dot_dimension_numbers<[1], [0], [0], [1], [0, 0, 1, 1], [], []>} : vector<1x32xf32>, vector<32x64xf32>, vector<1x64xf32> -> vector<1x64xf32>
    %c0_54 = arith.constant 0 : index
    %c0_55 = arith.constant 0 : index
    %81 = vector.load %arg10[%c0_54, %c0_55] : memref<1x64xf32, #tpu.memory_space<vmem>>, vector<1x64xf32>
    %82 = arith.addf %80, %81 : vector<1x64xf32>
    %cst_56 = arith.constant 0.000000e+00 : f32
    %83 = vector.broadcast %cst_56 : f32 to vector<1x64xf32>
    %84 = arith.maximumf %82, %83 : vector<1x64xf32>
    %c0_57 = arith.constant 0 : index
    %c0_58 = arith.constant 0 : index
    %85 = vector.load %arg11[%c0_57, %c0_58] : memref<64x32xf32, #tpu.memory_space<vmem>>, vector<64x32xf32>
    %cst_59 = arith.constant dense<0.000000e+00> : vector<1x32xf32>
    %86 = tpu.matmul %84, %85, %cst_59 {dimension_numbers = #tpu.dot_dimension_numbers<[1], [0], [0], [1], [0, 0, 1, 1], [], []>} : vector<1x64xf32>, vector<64x32xf32>, vector<1x32xf32> -> vector<1x32xf32>
    %c0_60 = arith.constant 0 : index
    %c0_61 = arith.constant 0 : index
    %87 = vector.load %arg12[%c0_60, %c0_61] : memref<1x32xf32, #tpu.memory_space<vmem>>, vector<1x32xf32>
    %88 = arith.addf %86, %87 : vector<1x32xf32>
    %cst_62 = arith.constant 0.000000e+00 : f32
    %89 = vector.broadcast %cst_62 : f32 to vector<1x32xf32>
    %90 = arith.maximumf %88, %89 : vector<1x32xf32>
    %c0_63 = arith.constant 0 : index
    %c0_64 = arith.constant 0 : index
    %91 = vector.load %arg13[%c0_63, %c0_64] : memref<2x32xf32, #tpu.memory_space<vmem>>, vector<1x32xf32>
    tpu.vector_store %arg13[%c0_63, %c0_64], %90 {strides = array<i32>} : memref<2x32xf32, #tpu.memory_space<vmem>>, vector<1x32xf32>,
    %92 = vector.extract_strided_slice %0 {offsets = [16, 0], sizes = [16, 64], strides = [1, 1]} : vector<32x64xf32> to vector<16x64xf32>
    %93 = vector.extract_strided_slice %92 {offsets = [0, 0], sizes = [12, 64], strides = [1, 1]} : vector<16x64xf32> to vector<12x64xf32>
    %c0_65 = arith.constant 0 : index
    %c0_66 = arith.constant 0 : index
    %c0_67 = arith.constant 0 : index
    %94 = vector.load %arg1[%c0_65, %c0_66, %c0_67] : memref<5x64x96xf32, #tpu.memory_space<vmem>>, vector<1x64x96xf32>
    %95 = vector.shape_cast %94 : vector<1x64x96xf32> to vector<64x96xf32>
    %cst_68 = arith.constant dense<0.000000e+00> : vector<12x96xf32>
    %96 = tpu.matmul %93, %95, %cst_68 {dimension_numbers = #tpu.dot_dimension_numbers<[1], [0], [0], [1], [0, 0, 1, 1], [], []>} : vector<12x64xf32>, vector<64x96xf32>, vector<12x96xf32> -> vector<12x96xf32>
    %97 = vector.extract_strided_slice %92 {offsets = [1, 0], sizes = [12, 64], strides = [1, 1]} : vector<16x64xf32> to vector<12x64xf32>
    %c1_69 = arith.constant 1 : index
    %c0_70 = arith.constant 0 : index
    %c0_71 = arith.constant 0 : index
    %98 = vector.load %arg1[%c1_69, %c0_70, %c0_71] : memref<5x64x96xf32, #tpu.memory_space<vmem>>, vector<1x64x96xf32>
    %99 = vector.shape_cast %98 : vector<1x64x96xf32> to vector<64x96xf32>
    %cst_72 = arith.constant dense<0.000000e+00> : vector<12x96xf32>
    %100 = tpu.matmul %97, %99, %cst_72 {dimension_numbers = #tpu.dot_dimension_numbers<[1], [0], [0], [1], [0, 0, 1, 1], [], []>} : vector<12x64xf32>, vector<64x96xf32>, vector<12x96xf32> -> vector<12x96xf32>
    %101 = arith.addf %96, %100 : vector<12x96xf32>
    %102 = vector.extract_strided_slice %92 {offsets = [2, 0], sizes = [12, 64], strides = [1, 1]} : vector<16x64xf32> to vector<12x64xf32>
    %c2_73 = arith.constant 2 : index
    %c0_74 = arith.constant 0 : index
    %c0_75 = arith.constant 0 : index
    %103 = vector.load %arg1[%c2_73, %c0_74, %c0_75] : memref<5x64x96xf32, #tpu.memory_space<vmem>>, vector<1x64x96xf32>
    %104 = vector.shape_cast %103 : vector<1x64x96xf32> to vector<64x96xf32>
    %cst_76 = arith.constant dense<0.000000e+00> : vector<12x96xf32>
    %105 = tpu.matmul %102, %104, %cst_76 {dimension_numbers = #tpu.dot_dimension_numbers<[1], [0], [0], [1], [0, 0, 1, 1], [], []>} : vector<12x64xf32>, vector<64x96xf32>, vector<12x96xf32> -> vector<12x96xf32>
    %106 = arith.addf %101, %105 : vector<12x96xf32>
    %107 = vector.extract_strided_slice %92 {offsets = [3, 0], sizes = [12, 64], strides = [1, 1]} : vector<16x64xf32> to vector<12x64xf32>
    %c3_77 = arith.constant 3 : index
    %c0_78 = arith.constant 0 : index
    %c0_79 = arith.constant 0 : index
    %108 = vector.load %arg1[%c3_77, %c0_78, %c0_79] : memref<5x64x96xf32, #tpu.memory_space<vmem>>, vector<1x64x96xf32>
    %109 = vector.shape_cast %108 : vector<1x64x96xf32> to vector<64x96xf32>
    %cst_80 = arith.constant dense<0.000000e+00> : vector<12x96xf32>
    %110 = tpu.matmul %107, %109, %cst_80 {dimension_numbers = #tpu.dot_dimension_numbers<[1], [0], [0], [1], [0, 0, 1, 1], [], []>} : vector<12x64xf32>, vector<64x96xf32>, vector<12x96xf32> -> vector<12x96xf32>
    %111 = arith.addf %106, %110 : vector<12x96xf32>
    %112 = vector.extract_strided_slice %92 {offsets = [4, 0], sizes = [12, 64], strides = [1, 1]} : vector<16x64xf32> to vector<12x64xf32>
    %c4_81 = arith.constant 4 : index
    %c0_82 = arith.constant 0 : index
    %c0_83 = arith.constant 0 : index
    %113 = vector.load %arg1[%c4_81, %c0_82, %c0_83] : memref<5x64x96xf32, #tpu.memory_space<vmem>>, vector<1x64x96xf32>
    %114 = vector.shape_cast %113 : vector<1x64x96xf32> to vector<64x96xf32>
    %cst_84 = arith.constant dense<0.000000e+00> : vector<12x96xf32>
    %115 = tpu.matmul %112, %114, %cst_84 {dimension_numbers = #tpu.dot_dimension_numbers<[1], [0], [0], [1], [0, 0, 1, 1], [], []>} : vector<12x64xf32>, vector<64x96xf32>, vector<12x96xf32> -> vector<12x96xf32>
    %116 = arith.addf %111, %115 : vector<12x96xf32>
    %117 = vector.extract_strided_slice %116 {offsets = [0, 0], sizes = [12, 88], strides = [1, 1]} : vector<12x96xf32> to vector<12x88xf32>
    %118 = vector.extract_strided_slice %116 {offsets = [0, 8], sizes = [12, 88], strides = [1, 1]} : vector<12x96xf32> to vector<12x88xf32>
    %119 = arith.maximumf %117, %118 : vector<12x88xf32>
    %120 = vector.extract_strided_slice %119 {offsets = [0, 0], sizes = [11, 88], strides = [1, 1]} : vector<12x88xf32> to vector<11x88xf32>
    %121 = vector.extract_strided_slice %119 {offsets = [1, 0], sizes = [11, 88], strides = [1, 1]} : vector<12x88xf32> to vector<11x88xf32>
    %122 = arith.maximumf %120, %121 : vector<11x88xf32>
    %c0_85 = arith.constant 0 : index
    %c0_86 = arith.constant 0 : index
    %123 = vector.load %arg3[%c0_85, %c0_86] : memref<6x11xf32, #tpu.memory_space<vmem>>, vector<6x11xf32>
    %cst_87 = arith.constant dense<0.000000e+00> : vector<6x88xf32>
    %124 = tpu.matmul %123, %122, %cst_87 {dimension_numbers = #tpu.dot_dimension_numbers<[1], [0], [0], [1], [0, 0, 1, 1], [], []>} : vector<6x11xf32>, vector<11x88xf32>, vector<6x88xf32> -> vector<6x88xf32>
    %c0_88 = arith.constant 0 : index
    %c0_89 = arith.constant 0 : index
    %125 = vector.load %arg2[%c0_88, %c0_89] : memref<1x88xf32, #tpu.memory_space<vmem>>, vector<1x88xf32>
    %126 = vector.broadcast %125 : vector<1x88xf32> to vector<6x88xf32>
    %127 = arith.addf %124, %126 : vector<6x88xf32>
    %cst_90 = arith.constant 0.000000e+00 : f32
    %128 = vector.broadcast %cst_90 : f32 to vector<6x88xf32>
    %129 = arith.maximumf %127, %128 : vector<6x88xf32>
    %130 = vector.extract_strided_slice %129 {offsets = [0, 0], sizes = [4, 88], strides = [1, 1]} : vector<6x88xf32> to vector<4x88xf32>
    %c0_91 = arith.constant 0 : index
    %c0_92 = arith.constant 0 : index
    %c0_93 = arith.constant 0 : index
    %131 = vector.load %arg4[%c0_91, %c0_92, %c0_93] : memref<3x88x64xf32, #tpu.memory_space<vmem>>, vector<1x88x64xf32>
    %132 = vector.shape_cast %131 : vector<1x88x64xf32> to vector<88x64xf32>
    %cst_94 = arith.constant dense<0.000000e+00> : vector<4x64xf32>
    %133 = tpu.matmul %130, %132, %cst_94 {dimension_numbers = #tpu.dot_dimension_numbers<[1], [0], [0], [1], [0, 0, 1, 1], [], []>} : vector<4x88xf32>, vector<88x64xf32>, vector<4x64xf32> -> vector<4x64xf32>
    %134 = vector.extract_strided_slice %129 {offsets = [1, 0], sizes = [4, 88], strides = [1, 1]} : vector<6x88xf32> to vector<4x88xf32>
    %c1_95 = arith.constant 1 : index
    %c0_96 = arith.constant 0 : index
    %c0_97 = arith.constant 0 : index
    %135 = vector.load %arg4[%c1_95, %c0_96, %c0_97] : memref<3x88x64xf32, #tpu.memory_space<vmem>>, vector<1x88x64xf32>
    %136 = vector.shape_cast %135 : vector<1x88x64xf32> to vector<88x64xf32>
    %cst_98 = arith.constant dense<0.000000e+00> : vector<4x64xf32>
    %137 = tpu.matmul %134, %136, %cst_98 {dimension_numbers = #tpu.dot_dimension_numbers<[1], [0], [0], [1], [0, 0, 1, 1], [], []>} : vector<4x88xf32>, vector<88x64xf32>, vector<4x64xf32> -> vector<4x64xf32>
    %138 = arith.addf %133, %137 : vector<4x64xf32>
    %139 = vector.extract_strided_slice %129 {offsets = [2, 0], sizes = [4, 88], strides = [1, 1]} : vector<6x88xf32> to vector<4x88xf32>
    %c2_99 = arith.constant 2 : index
    %c0_100 = arith.constant 0 : index
    %c0_101 = arith.constant 0 : index
    %140 = vector.load %arg4[%c2_99, %c0_100, %c0_101] : memref<3x88x64xf32, #tpu.memory_space<vmem>>, vector<1x88x64xf32>
    %141 = vector.shape_cast %140 : vector<1x88x64xf32> to vector<88x64xf32>
    %cst_102 = arith.constant dense<0.000000e+00> : vector<4x64xf32>
    %142 = tpu.matmul %139, %141, %cst_102 {dimension_numbers = #tpu.dot_dimension_numbers<[1], [0], [0], [1], [0, 0, 1, 1], [], []>} : vector<4x88xf32>, vector<88x64xf32>, vector<4x64xf32> -> vector<4x64xf32>
    %143 = arith.addf %138, %142 : vector<4x64xf32>
    %144 = vector.extract_strided_slice %143 {offsets = [0, 0], sizes = [4, 48], strides = [1, 1]} : vector<4x64xf32> to vector<4x48xf32>
    %145 = vector.extract_strided_slice %143 {offsets = [0, 16], sizes = [4, 48], strides = [1, 1]} : vector<4x64xf32> to vector<4x48xf32>
    %146 = arith.maximumf %144, %145 : vector<4x48xf32>
    %147 = vector.extract_strided_slice %146 {offsets = [0, 0], sizes = [3, 48], strides = [1, 1]} : vector<4x48xf32> to vector<3x48xf32>
    %148 = vector.extract_strided_slice %146 {offsets = [1, 0], sizes = [3, 48], strides = [1, 1]} : vector<4x48xf32> to vector<3x48xf32>
    %149 = arith.maximumf %147, %148 : vector<3x48xf32>
    %c0_103 = arith.constant 0 : index
    %c0_104 = arith.constant 0 : index
    %150 = vector.load %arg6[%c0_103, %c0_104] : memref<2x3xf32, #tpu.memory_space<vmem>>, vector<2x3xf32>
    %cst_105 = arith.constant dense<0.000000e+00> : vector<2x48xf32>
    %151 = tpu.matmul %150, %149, %cst_105 {dimension_numbers = #tpu.dot_dimension_numbers<[1], [0], [0], [1], [0, 0, 1, 1], [], []>} : vector<2x3xf32>, vector<3x48xf32>, vector<2x48xf32> -> vector<2x48xf32>
    %c0_106 = arith.constant 0 : index
    %c0_107 = arith.constant 0 : index
    %152 = vector.load %arg5[%c0_106, %c0_107] : memref<1x48xf32, #tpu.memory_space<vmem>>, vector<1x48xf32>
    %153 = vector.broadcast %152 : vector<1x48xf32> to vector<2x48xf32>
    %154 = arith.addf %151, %153 : vector<2x48xf32>
    %cst_108 = arith.constant 0.000000e+00 : f32
    %155 = vector.broadcast %cst_108 : f32 to vector<2x48xf32>
    %156 = arith.maximumf %154, %155 : vector<2x48xf32>
    %157 = vector.extract_strided_slice %156 {offsets = [0, 0], sizes = [1, 48], strides = [1, 1]} : vector<2x48xf32> to vector<1x48xf32>
    %c0_109 = arith.constant 0 : index
    %c0_110 = arith.constant 0 : index
    %c0_111 = arith.constant 0 : index
    %158 = vector.load %arg7[%c0_109, %c0_110, %c0_111] : memref<2x48x32xf32, #tpu.memory_space<vmem>>, vector<1x48x32xf32>
    %159 = vector.shape_cast %158 : vector<1x48x32xf32> to vector<48x32xf32>
    %cst_112 = arith.constant dense<0.000000e+00> : vector<1x32xf32>
    %160 = tpu.matmul %157, %159, %cst_112 {dimension_numbers = #tpu.dot_dimension_numbers<[1], [0], [0], [1], [0, 0, 1, 1], [], []>} : vector<1x48xf32>, vector<48x32xf32>, vector<1x32xf32> -> vector<1x32xf32>
    %161 = vector.extract_strided_slice %156 {offsets = [1, 0], sizes = [1, 48], strides = [1, 1]} : vector<2x48xf32> to vector<1x48xf32>
    %c1_113 = arith.constant 1 : index
    %c0_114 = arith.constant 0 : index
    %c0_115 = arith.constant 0 : index
    %162 = vector.load %arg7[%c1_113, %c0_114, %c0_115] : memref<2x48x32xf32, #tpu.memory_space<vmem>>, vector<1x48x32xf32>
    %163 = vector.shape_cast %162 : vector<1x48x32xf32> to vector<48x32xf32>
    %cst_116 = arith.constant dense<0.000000e+00> : vector<1x32xf32>
    %164 = tpu.matmul %161, %163, %cst_116 {dimension_numbers = #tpu.dot_dimension_numbers<[1], [0], [0], [1], [0, 0, 1, 1], [], []>} : vector<1x48xf32>, vector<48x32xf32>, vector<1x32xf32> -> vector<1x32xf32>
    %165 = arith.addf %160, %164 : vector<1x32xf32>
    %c0_117 = arith.constant 0 : index
    %c0_118 = arith.constant 0 : index
    %166 = vector.load %arg8[%c0_117, %c0_118] : memref<1x32xf32, #tpu.memory_space<vmem>>, vector<1x32xf32>
    %167 = arith.addf %165, %166 : vector<1x32xf32>
    %cst_119 = arith.constant 0.000000e+00 : f32
    %168 = vector.broadcast %cst_119 : f32 to vector<1x32xf32>
    %169 = arith.maximumf %167, %168 : vector<1x32xf32>
    %c0_120 = arith.constant 0 : index
    %c0_121 = arith.constant 0 : index
    %170 = vector.load %arg9[%c0_120, %c0_121] : memref<32x64xf32, #tpu.memory_space<vmem>>, vector<32x64xf32>
    %cst_122 = arith.constant dense<0.000000e+00> : vector<1x64xf32>
    %171 = tpu.matmul %169, %170, %cst_122 {dimension_numbers = #tpu.dot_dimension_numbers<[1], [0], [0], [1], [0, 0, 1, 1], [], []>} : vector<1x32xf32>, vector<32x64xf32>, vector<1x64xf32> -> vector<1x64xf32>
    %c0_123 = arith.constant 0 : index
    %c0_124 = arith.constant 0 : index
    %172 = vector.load %arg10[%c0_123, %c0_124] : memref<1x64xf32, #tpu.memory_space<vmem>>, vector<1x64xf32>
    %173 = arith.addf %171, %172 : vector<1x64xf32>
    %cst_125 = arith.constant 0.000000e+00 : f32
    %174 = vector.broadcast %cst_125 : f32 to vector<1x64xf32>
    %175 = arith.maximumf %173, %174 : vector<1x64xf32>
    %c0_126 = arith.constant 0 : index
    %c0_127 = arith.constant 0 : index
    %176 = vector.load %arg11[%c0_126, %c0_127] : memref<64x32xf32, #tpu.memory_space<vmem>>, vector<64x32xf32>
    %cst_128 = arith.constant dense<0.000000e+00> : vector<1x32xf32>
    %177 = tpu.matmul %175, %176, %cst_128 {dimension_numbers = #tpu.dot_dimension_numbers<[1], [0], [0], [1], [0, 0, 1, 1], [], []>} : vector<1x64xf32>, vector<64x32xf32>, vector<1x32xf32> -> vector<1x32xf32>
    %c0_129 = arith.constant 0 : index
    %c0_130 = arith.constant 0 : index
    %178 = vector.load %arg12[%c0_129, %c0_130] : memref<1x32xf32, #tpu.memory_space<vmem>>, vector<1x32xf32>
    %179 = arith.addf %177, %178 : vector<1x32xf32>
    %cst_131 = arith.constant 0.000000e+00 : f32
    %180 = vector.broadcast %cst_131 : f32 to vector<1x32xf32>
    %181 = arith.maximumf %179, %180 : vector<1x32xf32>
    %c1_132 = arith.constant 1 : index
    %c0_133 = arith.constant 0 : index
    %182 = vector.load %arg13[%c1_132, %c0_133] : memref<2x32xf32, #tpu.memory_space<vmem>>, vector<1x32xf32>
    tpu.vector_store %arg13[%c1_132, %c0_133], %181 {strides = array<i32>} : memref<2x32xf32, #tpu.memory_space<vmem>>, vector<1x32xf32>,
    return
  }
}

</mosaic_0001>

<bundles_post_ra>
// kernel: forward.1
= control target key start
LH: loop header
LB: loop body
LE: loop exit
PB: predicated region body
PF: predicated region fallthrough
CT: control target
= control target key end

     0   :  { %vm68_vm0 = vcmask 1046528   ;;  %vm72_vm1 = vcmask 523264   ;;  %s4701_s0 = inlined_call_operand.vmem [shape: f32[32,64], index: 0, kind: input, shape index: {}]   ;;  %s4702_s1 = inlined_call_operand.vmem [shape: f32[5,64,96], index: 1, kind: input, shape index: {}]   ;;  %s4703_s2 = inlined_call_operand.vmem [shape: f32[1,88], index: 2, kind: input, shape index: {}]   ;;  %s4704_s3 = inlined_call_operand.vmem [shape: f32[6,11], index: 3, kind: input, shape index: {}]   ;;  %s4705_s4 = inlined_call_operand.vmem [shape: f32[3,88,64], index: 4, kind: input, shape index: {}]   ;;  %s4706_s5 = inlined_call_operand.vmem [shape: f32[1,48], index: 5, kind: input, shape index: {}]   ;;  %s4707_s6 = inlined_call_operand.vmem [shape: f32[2,3], index: 6, kind: input, shape index: {}]   ;;  %s4708_s7 = inlined_call_operand.vmem [shape: f32[2,48,32], index: 7, kind: input, shape index: {}]   ;;  %s4709_s8 = inlined_call_operand.vmem [shape: f32[1,32], index: 8, kind: input, shape index: {}]   ;;  %s4710_s9 = inlined_call_operand.vmem [shape: f32[32,64], index: 9, kind: input, shape index: {}]   ;;  %s4711_s10 = inlined_call_operand.vmem [shape: f32[1,64], index: 10, kind: input, shape index: {}]   ;;  %s4712_s11 = inlined_call_operand.vmem [shape: f32[64,32], index: 11, kind: input, shape index: {}]   ;;  %s4713_s12 = inlined_call_operand.vmem [shape: f32[1,32], index: 12, kind: input, shape index: {}]   ;;  %s4714_s13 = inlined_call_operand.hbm [shape: f32[2,32], index: 13, kind: output, shape index: {}]  }
   0x1   :  { %v2542_v0 = vld [vmem:[%s4702_s1 + $0x40] sm:$0xff]  ;;  %v2543_v1 = vld [vmem:[%s4702_s1 + $0x48] sm:$0xff]  ;;  %v2544_v2 = vld [vmem:[%s4702_s1 + $0x50] sm:$0xff] }
   0x2   :  { %v3911_v3 = vpack.c.bf16 %v2543_v1, %v2542_v0  ;;  %v2545_v4 = vld [vmem:[%s4702_s1 + $0x58] sm:$0xff]  ;;  %v2546_v6 = vld [vmem:[%s4702_s1 + $0x60] sm:$0xff]  ;;  %v2547_v7 = vld [vmem:[%s4702_s1 + $0x68] sm:$0xff] }
   0x3   :  { %v3916_v5 = vpack.c.bf16 %v2545_v4, %v2544_v2  ;;  %v3927_v8 = vld [vmem:[%s4701_s0] sm:$0xff]  ;;  %v3933_v9 = vld [vmem:[%s4701_s0 + $0x8] sm:$0xff]  ;;  %v3939_v12 = vpack.c.bf16 %v2547_v7, %v2546_v6  ;;  %v2548_v13 = vld [vmem:[%s4702_s1 + $0x70] sm:$0xff] }
   0x4   :  { %3431 = vmatprep.subr.bf16.mxu0 %v3911_v3  ;;  %v69_v10 = vrot.slane %v3927_v8, 1  ;;  %v70_v11 = vrot.slane %v3933_v9, 1  ;;  %v2549_v14 = vld [vmem:[%s4702_s1 + $0x78] sm:$0xff]  ;;  %v49_v17 = vld [vmem:[%s4702_s1] sm:$0xff]  ;;  %v50_v18 = vld [vmem:[%s4702_s1 + $0x8] sm:$0xff] }
   0x5   :  { %3433 = vmatpush3.bf16.msra.mxu0 %v3911_v3  ;;  %v3951_v16 = vpack.c.bf16 %v2549_v14, %v2548_v13  ;;  %v3961_v19 = vpack.c.bf16 %v50_v18, %v49_v17  ;;  %v51_v20 = vld [vmem:[%s4702_s1 + $0x10] sm:$0xff]  ;;  %v52_v21 = vld [vmem:[%s4702_s1 + $0x18] sm:$0xff] }
   0x6   :  { %3435 = vmatprep.subr.bf16.mxu0 %v3916_v5  ;;  %v71_v15 = vsel %vm68_vm0, %v69_v10, %v70_v11 }
   0x7   :  { %2962 = vmatprep.mubr.msk.f32.mxu0 %vm72_vm1, %v71_v15 }
   0x9   :  { %3437 = vmatpush3.bf16.msra.mxu0 %v3916_v5 }
   0xa   :  { %3439 = vmatprep.subr.bf16.mxu0 %v3939_v12 }
   0xd   :  { %3441 = vmatpush3.bf16.msra.mxu0 %v3939_v12 }
   0xe   :  { %3443 = vmatprep.subr.bf16.mxu0 %v3951_v16 }
   0xf   :  { %18 = vsyncpa [#allocation3], 0  ;;  %v3971_v22 = vpack.c.bf16 %v52_v21, %v51_v20  ;;  %v53_v23 = vld [vmem:[%s4702_s1 + $0x20] sm:$0xff]  ;;  %v54_v24 = vld [vmem:[%s4702_s1 + $0x28] sm:$0xff]  ;;  %v241_v32 = vrot.slane %v3927_v8, 2  ;;  %v242_v33 = vrot.slane %v3933_v9, 2 }
  0x10   :  { %v3984_v25 = vpack.c.bf16 %v54_v24, %v53_v23  ;;  %v55_v26 = vld [vmem:[%s4702_s1 + $0x30] sm:$0xff]  ;;  %v56_v27 = vld [vmem:[%s4702_s1 + $0x38] sm:$0xff]  ;;  %v2554_v29 = vld [vmem:[%s4702_s1 + $0x80] sm:$0xff]  ;;  %vm240_vm2 = vcmask 1045504   ;;  %v335_v47 = vrot.slane %v3927_v8, 3  ;;  %v336_v48 = vrot.slane %v3933_v9, 3 }
  0x11   :  { %3445 = vmatpush3.bf16.msra.mxu0 %v3951_v16  ;;  %v3994_v28 = vpack.c.bf16 %v56_v27, %v55_v26  ;;  %v2555_v30 = vld [vmem:[%s4702_s1 + $0x88] sm:$0xff]  ;;  %v2556_v34 = vld [vmem:[%s4702_s1 + $0x90] sm:$0xff]  ;;  %v2557_v35 = vld [vmem:[%s4702_s1 + $0x98] sm:$0xff]  ;;  %v243_v37 = vsel %vm240_vm2, %v241_v32, %v242_v33  ;;  %vm334_vm3 = vcmask 1044480   ;;  %v429_v62 = vrot.slane %v3927_v8, 4  ;;  %s3830_s30 = smov 112  }
  0x12   :  { %3447 = vmatprep.subr.bf16.mxu0 %v3961_v19  ;;  %v4004_v31 = vpack.c.bf16 %v2555_v30, %v2554_v29  ;;  %v4016_v36 = vpack.c.bf16 %v2557_v35, %v2556_v34  ;;  %v2558_v38 = vld [vmem:[%s4702_s1 + $0xa0] sm:$0xff]  ;;  %v2559_v39 = vld [vmem:[%s4702_s1 + $0xa8] sm:$0xff]  ;;  %v2560_v41 = vld [vmem:[%s4702_s1 + $0xb0] sm:$0xff]  ;;  %v337_v52 = vsel %vm334_vm3, %v335_v47, %v336_v48  ;;  %v430_v63 = vrot.slane %v3933_v9, 4 }
  0x13   :  { %v4030_v40 = vpack.c.bf16 %v2559_v39, %v2558_v38  ;;  %v2561_v42 = vld [vmem:[%s4702_s1 + $0xb8] sm:$0xff]  ;;  %v2564_v44 = vld [vmem:[%s4702_s1 + $0xc0] sm:$0xff]  ;;  %v2565_v45 = vld [vmem:[%s4702_s1 + $0xc8] sm:$0xff]  ;;  %vm428_vm4 = vcmask 1043456   ;;  %v3825_v15 = vmov 0.0|0.0   ;;  %vm3826_vm5 = vmmov 0  }
  0x14   :  { %2963 = vmatmul.mubr.msk.f32.vlgmr.msra.gmra.mrb[0].mxu0 %vm72_vm1, %v70_v11  ;;  %v4040_v43 = vpack.c.bf16 %v2561_v42, %v2560_v41  ;;  %v4050_v46 = vpack.c.bf16 %v2565_v45, %v2564_v44  ;;  %v2566_v49 = vld [vmem:[%s4702_s1 + $0xd0] sm:$0xff]  ;;  %v2567_v50 = vld [vmem:[%s4702_s1 + $0xd8] sm:$0xff]  ;;  %v2568_v53 = vld [vmem:[%s4702_s1 + $0xe0] sm:$0xff]  ;;  %v431_v4 = vsel %vm428_vm4, %v429_v62, %v430_v63  ;;  %3514 = vmatprep.subr.bf16.mxu1 %v3825_v15  ;;  %v4716_v18 = vmov 0.0  }
  0x15   :  { %3449 = vmatpush3.bf16.msra.mxu0 %v3961_v19  ;;  %2981 = vmatprep.mubr.msk.f32.mxu0 %vm72_vm1, %v3927_v8  ;;  %v4062_v51 = vpack.c.bf16 %v2567_v50, %v2566_v49  ;;  %v2569_v54 = vld [vmem:[%s4702_s1 + $0xe8] sm:$0xff]  ;;  %v2570_v56 = vld [vmem:[%s4702_s1 + $0xf0] sm:$0xff]  ;;  %v2571_v57 = vld [vmem:[%s4702_s1 + $0xf8] sm:$0xff]  ;;  %vm544_vm6 = vcmask 1042432   ;;  %vm3829_vm7 = vmmov 1   ;;  %vm540_vm9 = vcmask 89088  }
  0x16   :  { %3451 = vmatprep.subr.bf16.mxu0 %v3971_v22  ;;  %v4075_v55 = vpack.c.bf16 %v2569_v54, %v2568_v53  ;;  %v4085_v58 = vpack.c.bf16 %v2571_v57, %v2570_v56  ;;  %v2574_v59 = vld [vmem:[%s4702_s1 + $0x100] sm:$0xff]  ;;  %v2575_v60 = vld [vmem:[%s4702_s1 + $0x108] sm:$0xff]  ;;  %v2576_v0 = vld [vmem:[%s4702_s1 + $0x110] sm:$0xff]  ;;  %3070 = vmatprep.mubr.msk.f32.mxu1 %vm3826_vm5, %v4716_v18  ;;  %vm644_vm10 = vcmask 719872   ;;  %vm892_vm11 = vcmask 23552  }
  0x17   :  { %v4095_v61 = vpack.c.bf16 %v2575_v60, %v2574_v59  ;;  %v2577_v1 = vld [vmem:[%s4702_s1 + $0x118] sm:$0xff]  ;;  %v2578_v6 = vld [vmem:[%s4702_s1 + $0x120] sm:$0xff]  ;;  %v2579_v7 = vld [vmem:[%s4702_s1 + $0x128] sm:$0xff]  ;;  %vm985_vm12 = vcmask 392192   ;;  %vm1138_vm13 = vcmask 261120   ;;  %vm1296_vm14 = vcmask 253952  }
  0x18   :  { %v4107_v2 = vpack.c.bf16 %v2577_v1, %v2576_v0  ;;  %v4120_v8 = vpack.c.bf16 %v2579_v7, %v2578_v6  ;;  %v2581_v10 = vld [vmem:[%s4702_s1 + $0x138] sm:$0xff]  ;;  %v2588_v21 = vld [vmem:[%s4705_s4 + $0x60] sm:$0xff]  ;;  %v2589_v23 = vld [vmem:[%s4705_s4 + $0x68] sm:$0xff] }
  0x19   :  { %3453 = vmatpush3.bf16.msra.mxu0 %v3971_v22  ;;  %v2587_v20 = vld [vmem:[%s4705_s4 + $0x58] sm:$0xff]  ;;  %v2590_v26 = vld [vmem:[%s4705_s4 + $0x70] sm:$0xff]  ;;  %v2592_v30 = vld [vmem:[%s4705_s4 + $0x80] sm:$0xff] }
  0x1a   :  { %3455 = vmatprep.subr.bf16.mxu0 %v3984_v25  ;;  %v4152_v24 = vpack.c.bf16 %v2588_v21, %v2587_v20  ;;  %v4158_v27 = vpack.c.bf16 %v2590_v26, %v2589_v23  ;;  %v2591_v29 = vld [vmem:[%s4705_s4 + $0x78] sm:$0xff]  ;;  %v2594_v34 = vld [vmem:[%s4705_s4 + $0x90] sm:$0xff]  ;;  %vm4185_vm8 = vmpackc.low %vm544_vm6, %vm3829_vm7 }
  0x1b   :  { %v4168_v32 = vpack.c.bf16 %v2592_v30, %v2591_v29  ;;  %v532_v53 = vld [vmem:[%s4704_s3] sm:$0x3f]  ;;  %v2595_v54 = vld [vmem:[%s4705_s4 + $0x98] sm:$0xff]  ;;  %v4211_v59 = vld [vmem:[%s4705_s4 + $0xa8] sm:$0xff] }
  0x1c   :  { %3516 = vmatpush3.bf16.msra.mxu1 %v4152_v24  ;;  %v2596_v56 = vld [vmem:[%s4705_s4 + $0xa0] sm:$0xff]  ;;  %v624_v20 = vld [vmem:[%s4705_s4 + $0x28] sm:$0xff]  ;;  %v625_v23 = vld [vmem:[%s4705_s4 + $0x30] sm:$0xff] }
  0x1d   :  { %3457 = vmatpush3.bf16.msra.mxu0 %v3984_v25  ;;  %3517 = vmatprep.subr.bf16.mxu1 %v3825_v15  ;;  %v4204_v57 = vpack.c.bf16 %v2596_v56, %v2595_v54  ;;  %v4218_v60 = vld [vmem:[%s4703_s2] ss:$0 sm:$0xff]  ;;  %v626_v26 = vld [vmem:[%s4705_s4 + $0x38] sm:$0xff]  ;;  %v2608_v56 = vld [vmem:[%s4705_s4 + $0xf0] sm:$0xff] }
  0x1e   :  { %3459 = vmatprep.subr.bf16.mxu0 %v3994_v28  ;;  %v619_v1 = vld [vmem:[%s4705_s4] sm:$0xff]  ;;  %v4259_v29 = vpack.c.bf16 %v626_v26, %v625_v23 }
  0x1f   :  { %v627_v30 = vld [vmem:[%s4705_s4 + $0x40] sm:$0xff] }
  0x20   :  { %3519 = vmatpush3.bf16.msra.mxu1 %v4158_v27 }
  0x21   :  { %3461 = vmatpush3.bf16.msra.mxu0 %v3994_v28  ;;  %3520 = vmatprep.subr.bf16.mxu1 %v3825_v15 }
  0x22   :  { %3463 = vmatprep.subr.bf16.mxu0 %v4004_v31 }
  0x24   :  { %2982 = vmatmul.mubr.msk.f32.vlgmr.msra.gmra.mrb[0].mxu0 %vm72_vm1, %v3933_v9  ;;  %v2580_v9 = vld [vmem:[%s4702_s1 + $0x130] sm:$0xff]  ;;  %s3828_s1 = smov 120   ;;  %3522 = vmatpush3.bf16.msra.mxu1 %v4168_v32 }
  0x25   :  { %3465 = vmatpush3.bf16.msra.mxu0 %v4004_v31  ;;  %3000 = vmatprep.mubr.msk.f32.mxu0 %vm72_vm1, %v243_v37  ;;  %v4130_v11 = vpack.c.bf16 %v2581_v10, %v2580_v9  ;;  %v621_v10 = vld [vmem:[%s4705_s4 + $0x10] sm:$0xff] }
  0x26   :  { %3467 = vmatprep.subr.bf16.mxu0 %v4016_v36  ;;  %3523 = vmatprep.subr.bf16.mxu1 %v3825_v15 }
  0x29   :  { %3469 = vmatpush3.bf16.msra.mxu0 %v4016_v36 }
  0x2a   :  { %3471 = vmatprep.subr.bf16.mxu0 %v4030_v40 }
  0x2d   :  { %3473 = vmatpush3.bf16.msra.mxu0 %v4030_v40 }
  0x2e   :  { %3475 = vmatprep.subr.bf16.mxu0 %v4040_v43 }
  0x31   :  { %3477 = vmatpush3.bf16.msra.mxu0 %v4040_v43 }
  0x32   :  { %3479 = vmatprep.subr.bf16.mxu0 %v4050_v46 }
  0x34   :  { %3001 = vmatmul.mubr.msk.f32.vlgmr.msra.gmra.mrb[0].mxu0 %vm72_vm1, %v242_v33  ;;  %v2593_v33 = vld [vmem:[%s4705_s4 + $0x88] sm:$0xff] }
  0x35   :  { %3481 = vmatpush3.bf16.msra.mxu0 %v4050_v46  ;;  %3019 = vmatprep.mubr.msk.f32.mxu0 %vm72_vm1, %v337_v52  ;;  %v4178_v35 = vpack.c.bf16 %v2594_v34, %v2593_v33  ;;  %v628_v33 = vld [vmem:[%s4705_s4 + $0x48] sm:$0xff] }
  0x36   :  { %3483 = vmatprep.subr.bf16.mxu0 %v4062_v51  ;;  %v4269_v34 = vpack.c.bf16 %v628_v33, %v627_v30  ;;  %v2615_v33 = vld [vmem:[%s4708_s7 + $0x30] sm:$0xff] }
  0x37   :  { %3525 = vmatpush3.bf16.msra.mxu1 %v4178_v35 }
  0x38   :  { %3526 = vmatprep.subr.bf16.mxu1 %v3825_v15 }
  0x39   :  { %3485 = vmatpush3.bf16.msra.mxu0 %v4062_v51 }
  0x3a   :  { %3487 = vmatprep.subr.bf16.mxu0 %v4075_v55 }
  0x3b   :  { %3528 = vmatpush3.bf16.msra.mxu1 %v4204_v57 }
  0x3c   :  { %3068 = vmatprep.subr.mxu1 %v4716_v18 }
  0x3d   :  { %3489 = vmatpush3.bf16.msra.mxu0 %v4075_v55 }
  0x3e   :  { %3491 = vmatprep.subr.bf16.mxu0 %v4085_v58 }
  0x3f   :  { %3069 = vmatpush3.msra.mxu1 %v4211_v59 }
  0x40   :  { %3529 = vmatprep.subr.bf16.mxu1 %v3825_v15 }
  0x41   :  { %3493 = vmatpush3.bf16.msra.mxu0 %v4085_v58 }
  0x42   :  { %3495 = vmatprep.subr.bf16.mxu0 %v4095_v61 }
  0x44   :  { %3020 = vmatmul.mubr.msk.f32.vlgmr.msra.gmra.mrb[0].mxu0 %vm72_vm1, %v336_v48 }
  0x45   :  { %3497 = vmatpush3.bf16.msra.mxu0 %v4095_v61  ;;  %3038 = vmatprep.mubr.msk.f32.mxu0 %vm72_vm1, %v431_v4  ;;  %v620_v4 = vld [vmem:[%s4705_s4 + $0x8] sm:$0xff] }
  0x46   :  { %3499 = vmatprep.subr.bf16.mxu0 %v4107_v2  ;;  %v4227_v7 = vpack.c.bf16 %v620_v4, %v619_v1  ;;  %v970_v4 = vld [vmem:[%s4708_s7] sm:$0xff] }
  0x49   :  { %3501 = vmatpush3.bf16.msra.mxu0 %v4107_v2 }
  0x4a   :  { %3503 = vmatprep.subr.bf16.mxu0 %v4120_v8 }
  0x4d   :  { %3505 = vmatpush3.bf16.msra.mxu0 %v4120_v8 }
  0x4e   :  { %3507 = vmatprep.subr.bf16.mxu0 %v4130_v11 }
  0x51   :  { %3509 = vmatpush3.bf16.msra.mxu0 %v4130_v11 }
  0x52   :  { %3510 = vmatprep.subr.bf16.mxu0 %v3825_v15 }
  0x54   :  { %3039 = vmatmul.mubr.msk.f32.vlgmr.msra.gmra.mrb[0].mxu0 %vm72_vm1, %v430_v63 }
  0x55   :  { %3045 = vmatprep.mubr.msk.f32.mxu0 %vm3826_vm5, %v4716_v18 }
 0x127   :  { %v3040_v13 = vpop.f32.mrb[0].mxu0 }
 0x128   :  { %v502_v14 = vpop.f32.mrb[1].mxu0 }
 0x129   :  { %v3791_v17 = vpack.i.bf16 %v3040_v13, %v502_v14 }
 0x12b   :  { %3792 = vrot.lane.b32.xlu0 %v3791_v17, %s3828_s1  ;;  %v623_v17 = vld [vmem:[%s4705_s4 + $0x20] sm:$0xff] }
 0x12c   :  { %v4249_v21 = vpack.c.bf16 %v624_v20, %v623_v17 }
 0x19d   :  { %v3793_v37 = vpop.permute.xlu0 %3792 }
 0x19e   :  { %v3795_v38 = vunpack.i.h.bf16 %v3793_v37  ;;  %v3794_v39 = vunpack.i.l.bf16 %v3793_v37  ;;  %v2600_v37 = vld [vmem:[%s4705_s4 + $0xb0] sm:$0xff] }
 0x1a0   :  { %v522_v41 = vmax.f32 %v3040_v13, %v3795_v38  ;;  %v521_v42 = vmax.f32 %v502_v14, %v3794_v39  ;;  %v622_v13 = vld [vmem:[%s4705_s4 + $0x18] sm:$0xff]  ;;  %v4283_v39 = vld [vmem:[%s4705_s4 + $0x50] sm:$0xff] }
 0x1a1   :  { %v4237_v14 = vpack.c.bf16 %v622_v13, %v621_v10  ;;  %v2601_v38 = vld [vmem:[%s4705_s4 + $0xb8] sm:$0xff] }
 0x1a2   :  { %v526_v44 = vrot.slane %v522_v41, 1  ;;  %v525_v45 = vrot.slane %v521_v42, 1  ;;  %v973_v13 = vld [vmem:[%s4708_s7 + $0x18] sm:$0xff] }
 0x1a4   :  { %v531_v47 = vmax.f32 %v522_v41, %v526_v44  ;;  %v527_v48 = vsel %vm68_vm0, %v525_v45, %v526_v44  ;;  %v4285_v41 = vpack.c.bf16 %v2601_v38, %v2600_v37  ;;  %v2603_v44 = vld [vmem:[%s4705_s4 + $0xc8] sm:$0xff]  ;;  %v2616_v37 = vld [vmem:[%s4708_s7 + $0x38] sm:$0xff] }
 0x1a5   :  { %v530_v49 = vmax.f32 %v521_v42, %v527_v48  ;;  %v2602_v42 = vld [vmem:[%s4705_s4 + $0xc0] sm:$0xff]  ;;  %v2605_v48 = vld [vmem:[%s4705_s4 + $0xd8] sm:$0xff] }
 0x1a6   :  { %v4297_v45 = vpack.c.bf16 %v2603_v44, %v2602_v42  ;;  %v884_v44 = vld [vmem:[%s4707_s6] sm:$0x3] }
 0x1a7   :  { %v3511_v52 = vpack.c.bf16 %v531_v47, %v530_v49  ;;  %v2604_v47 = vld [vmem:[%s4705_s4 + $0xd0] sm:$0xff] }
 0x1a8   :  { %v4309_v49 = vpack.c.bf16 %v2605_v48, %v2604_v47  ;;  %v4374_v47 = vpack.c.bf16 %v2616_v37, %v2615_v33  ;;  %v2617_v48 = vld [vmem:[%s4708_s7 + $0x40] sm:$0xff] }
 0x1a9   :  { %3513 = vmatpush3.bf16.msk.msra.mxu0 %vm4185_vm8, %v3511_v52  ;;  %v2606_v52 = vld [vmem:[%s4705_s4 + $0xe0] sm:$0xff] }
 0x1aa   :  { %3568 = vmatprep.subr.bf16.mxu0 %v3825_v15  ;;  %v1133_v37 = vld [vmem:[%s4710_s9] sm:$0xff] }
 0x1ac   :  { %3046 = vmatmul.mubr.msk.f32.vlgmr.msra.gmra.mrb[2].mxu0 %vm540_vm9, %v532_v53  ;;  %v2607_v53 = vld [vmem:[%s4705_s4 + $0xe8] sm:$0xff] }
 0x1ad   :  { %3155 = vmatprep.mubr.msk.f32.mxu0 %vm3826_vm5, %v4716_v18  ;;  %v4319_v54 = vpack.c.bf16 %v2607_v53, %v2606_v52  ;;  %v2618_v52 = vld [vmem:[%s4708_s7 + $0x48] sm:$0xff] }
 0x1ae   :  { %v4389_v53 = vpack.c.bf16 %v2618_v52, %v2617_v48  ;;  %v1136_v48 = vld [vmem:[%s4710_s9 + $0x18] sm:$0xff] }
 0x27f   :  { %v614_v62 = vpop.f32.mrb[2].mxu0 }
 0x280   :  { %v615_v63 = vadd.f32 %v4218_v60, %v614_v62  ;;  %v3047_v0 = vpop.f32.mrb[3].mxu0  ;;  %v2609_v62 = vld [vmem:[%s4705_s4 + $0xf8] sm:$0xff] }
 0x281   :  { %v4337_v0 = vld [vmem:[%s4705_s4 + $0x100] sm:$0xff] }
 0x282   :  { %v618_v6 = vmax.f32 %v615_v63, 0.0  ;;  %v4329_v63 = vpack.c.bf16 %v2609_v62, %v2608_v56  ;;  %v974_v56 = vld [vmem:[%s4708_s7 + $0x20] sm:$0xff]  ;;  %v975_v62 = vld [vmem:[%s4708_s7 + $0x28] sm:$0xff] }
 0x284   :  { %v643_v9 = vrot.slane %v618_v6, 1  ;;  %v801_v1 = vrot.slane %v618_v6, 2 }
 0x286   :  { %3071 = vmatmul.mubr.msk.f32.vlgmr.msra.gmra.mrb[0].mxu1 %vm644_vm10, %v643_v9  ;;  %v971_v9 = vld [vmem:[%s4708_s7 + $0x8] sm:$0xff] }
 0x287   :  { %3531 = vmatpush3.bf16.msra.mxu1 %v4227_v7  ;;  %3095 = vmatprep.mubr.msk.f32.mxu1 %vm3826_vm5, %v4716_v18  ;;  %v4350_v10 = vpack.c.bf16 %v971_v9, %v970_v4  ;;  %v2619_v4 = vld [vmem:[%s4708_s7 + $0x50] sm:$0xff]  ;;  %v2620_v9 = vld [vmem:[%s4708_s7 + $0x58] sm:$0xff] }
 0x288   :  { %3532 = vmatprep.subr.bf16.mxu1 %v3825_v15 }
 0x289   :  { %3570 = vmatpush3.bf16.msra.mxu0 %v4350_v10 }
 0x28a   :  { %3571 = vmatprep.subr.bf16.mxu0 %v3825_v15 }
 0x28b   :  { %3534 = vmatpush3.bf16.msra.mxu1 %v4237_v14 }
 0x28c   :  { %3535 = vmatprep.subr.bf16.mxu1 %v3825_v15 }
 0x28f   :  { %3537 = vmatpush3.bf16.msra.mxu1 %v4249_v21 }
 0x290   :  { %3538 = vmatprep.subr.bf16.mxu1 %v3825_v15 }
 0x293   :  { %3540 = vmatpush3.bf16.msra.mxu1 %v4259_v29 }
 0x294   :  { %3541 = vmatprep.subr.bf16.mxu1 %v3825_v15 }
 0x297   :  { %3543 = vmatpush3.bf16.msra.mxu1 %v4269_v34 }
 0x298   :  { %3093 = vmatprep.subr.mxu1 %v4716_v18 }
 0x29b   :  { %3094 = vmatpush3.msra.mxu1 %v4283_v39 }
 0x29c   :  { %3096 = vmatmul.mubr.msk.f32.vlgmr.msra.gmra.mrb[0].mxu1 %vm644_vm10, %v618_v6  ;;  %3544 = vmatprep.subr.bf16.mxu1 %v3825_v15  ;;  %v972_v6 = vld [vmem:[%s4708_s7 + $0x10] sm:$0xff] }
 0x29d   :  { %3546 = vmatpush3.bf16.msra.mxu1 %v4285_v41  ;;  %3120 = vmatprep.mubr.msk.f32.mxu1 %vm3826_vm5, %v4716_v18  ;;  %v4359_v17 = vpack.c.bf16 %v973_v13, %v972_v6  ;;  %v4408_v6 = vpack.c.bf16 %v2620_v9, %v2619_v4  ;;  %v4416_v13 = vld [vmem:[%s4706_s5] ss:$0 sm:$0xff] }
 0x29e   :  { %3547 = vmatprep.subr.bf16.mxu1 %v3825_v15 }
 0x29f   :  { %3573 = vmatpush3.bf16.msra.mxu0 %v4359_v17 }
 0x2a0   :  { %3574 = vmatprep.subr.bf16.mxu0 %v3825_v15 }
 0x2a1   :  { %3549 = vmatpush3.bf16.msra.mxu1 %v4297_v45 }
 0x2a2   :  { %3550 = vmatprep.subr.bf16.mxu1 %v3825_v15 }
 0x2a5   :  { %3552 = vmatpush3.bf16.msra.mxu1 %v4309_v49 }
 0x2a6   :  { %3553 = vmatprep.subr.bf16.mxu1 %v3825_v15 }
 0x2a9   :  { %3555 = vmatpush3.bf16.msra.mxu1 %v4319_v54 }
 0x2aa   :  { %3556 = vmatprep.subr.bf16.mxu1 %v3825_v15 }
 0x2ad   :  { %3558 = vmatpush3.bf16.msra.mxu1 %v4329_v63 }
 0x2ae   :  { %3118 = vmatprep.subr.mxu1 %v4716_v18 }
 0x2b1   :  { %3119 = vmatpush3.msra.mxu1 %v4337_v0 }
 0x2b2   :  { %3121 = vmatmul.mubr.msk.f32.vlgmr.msra.gmra.mrb[0].mxu1 %vm644_vm10, %v801_v1  ;;  %3123 = vmatprep.subr.mxu1 %v4716_v18  ;;  %v4398_v1 = vpack.c.bf16 %v975_v62, %v974_v56  ;;  %v4448_v56 = vld [vmem:[%s4701_s0 + $0x10] sm:$0xff]  ;;  %v4453_v62 = vld [vmem:[%s4701_s0 + $0x18] sm:$0xff] }
 0x2b3   :  { %3125 = vmatprep.mubr.msk.f32.mxu1 %vm3826_vm5, %v4716_v18  ;;  %v1669_v4 = vrot.slane %v4448_v56, 4  ;;  %v4715_v9 = vrot.slane %v4453_v62, 4 }
 0x2b4   :  { %3576 = vmatpush3.bf16.msra.mxu0 %v4398_v1 }
 0x2b5   :  { %3583 = vmatprep.subr.bf16.mxu0 %v3825_v15 }
 0x385   :  { %v870_v20 = vpop.f32.mrb[0].mxu1 }
 0x386   :  { %876 = vrot.lane.b32.xlu0 %v870_v20, %s3830_s30  ;;  %v3122_v23 = vpop.f32.mrb[1].mxu1 }
 0x3f8   :  { %v877_v26 = vpop.permute.xlu0 %876 }
 0x3f9   :  { %v879_v30 = vmax.f32 %v870_v20, %v877_v26 }
 0x3fb   :  { %v881_v38 = vrot.slane %v879_v30, 1 }
 0x3fd   :  { %v883_v42 = vmax.f32 %v879_v30, %v881_v38  ;;  %v1134_v38 = vld [vmem:[%s4710_s9 + $0x8] sm:$0xff] }
 0x3ff   :  { %3124 = vmatpush3.msk.msra.mxu1 %vm544_vm6, %v883_v42  ;;  %v4431_v42 = vpack.c.bf16 %v1134_v38, %v1133_v37  ;;  %v1216_v37 = vld [vmem:[%s4712_s11 + $0x18] sm:$0xff] }
 0x400   :  { %3126 = vmatmul.mubr.msk.f32.vlgmr.msra.gmra.mrb[2].mxu1 %vm892_vm11, %v884_v44  ;;  %3559 = vmatprep.subr.bf16.mxu1 %v3825_v15  ;;  %v1135_v44 = vld [vmem:[%s4710_s9 + $0x10] sm:$0xff] }
 0x401   :  { %3561 = vmatpush3.bf16.msra.mxu1 %v4374_v47  ;;  %3140 = vmatprep.mubr.msk.f32.mxu1 %vm3826_vm5, %v4716_v18  ;;  %v4441_v52 = vpack.c.bf16 %v1136_v48, %v1135_v44  ;;  %v1217_v44 = vld [vmem:[%s4712_s11 + $0x20] sm:$0xff]  ;;  %v1218_v48 = vld [vmem:[%s4712_s11 + $0x28] sm:$0xff] }
 0x402   :  { %3562 = vmatprep.subr.bf16.mxu1 %v3825_v15 }
 0x403   :  { %4723 = vst [vmem:[#allocation5_spill] sm:$0xff] %v4441_v52 }
 0x405   :  { %3564 = vmatpush3.bf16.msra.mxu1 %v4389_v53 }
 0x406   :  { %3565 = vmatprep.subr.bf16.mxu1 %v3825_v15 }
 0x409   :  { %3567 = vmatpush3.bf16.msra.mxu1 %v4408_v6 }
 0x40a   :  { %3577 = vmatprep.subr.bf16.mxu1 %v3825_v15 }
 0x4d3   :  { %v965_v20 = vpop.f32.mrb[2].mxu1 }
 0x4d4   :  { %v966_v23 = vadd.f32 %v4416_v13, %v965_v20  ;;  %v3127_v26 = vpop.f32.mrb[3].mxu1  ;;  %v4460_v20 = vsel %vm428_vm4, %v1669_v4, %v4715_v9  ;;  %v4487_v4 = vpack.c.bf16 %v1218_v48, %v1217_v44  ;;  %v1317_v44 = vrot.slane %v4453_v62, 1 }
 0x4d5   :  { %v1214_v26 = vld [vmem:[%s4712_s11 + $0x8] sm:$0xff] }
 0x4d6   :  { %v969_v30 = vmax.f32 %v966_v23, 0.0  ;;  %v1213_v23 = vld [vmem:[%s4712_s11] sm:$0xff]  ;;  %4725 = vst [vmem:[#allocation7_spill] sm:$0xff] %v4487_v4 }
 0x4d8   :  { %v984_v33 = vrot.slane %v969_v30, 1  ;;  %3156 = vmatmul.mubr.msk.f32.vlgmr.msra.gmra.mrb[4].mxu0 %vm985_vm12, %v969_v30  ;;  %v1215_v30 = vld [vmem:[%s4712_s11 + $0x10] sm:$0xff] }
 0x4d9   :  { %3185 = vmatprep.mubr.msk.f32.mxu0 %vm3826_vm5, %v4716_v18  ;;  %v4477_v38 = vpack.c.bf16 %v1216_v37, %v1215_v30  ;;  %v1130_v37 = vld [vmem:[%s4709_s8] sm:$0x1] }
 0x4da   :  { %3141 = vmatmul.mubr.msk.f32.vlgmr.msra.gmra.mrb[4].mxu1 %vm985_vm12, %v984_v33  ;;  %v4471_v33 = vpack.c.bf16 %v1214_v26, %v1213_v23 }
 0x4db   :  { %3166 = vmatprep.mubr.msk.f32.mxu1 %vm3826_vm5, %v4716_v18  ;;  %3579 = vmatpush3.bf16.msra.mxu1 %v4431_v42  ;;  %4724 = vst [vmem:[#allocation6_spill] sm:$0xff] %v4477_v38 }
 0x4dc   :  { %3580 = vmatprep.subr.bf16.mxu1 %v3825_v15  ;;  %3585 = vmatpush3.bf16.msra.mxu0 %v4471_v33 }
 0x4dd   :  { %3586 = vmatprep.subr.bf16.mxu0 %v3825_v15 }
 0x4df   :  { %3582 = vmatpush3.bf16.msra.mxu1 %v4441_v52  ;;  %v1316_v52 = vrot.slane %v4448_v56, 1 }
 0x4e0   :  { %3596 = vmatprep.subr.bf16.mxu1 %v3911_v3  ;;  %3588 = vmatpush3.bf16.msra.mxu0 %v4477_v38 }
 0x4e1   :  { %3589 = vmatprep.subr.bf16.mxu0 %v3825_v15 }
 0x4e4   :  { %3591 = vmatpush3.bf16.msra.mxu0 %v4487_v4  ;;  %v1318_v4 = vsel %vm68_vm0, %v1316_v52, %v1317_v44 }
 0x4e5   :  { %3592 = vmatprep.subr.bf16.mxu0 %v3825_v15 }
 0x5ab   :  { %v1126_v23 = vpop.f32.mrb[4].mxu0 }
 0x5ac   :  { %v3157_v26 = vpop.f32.mrb[5].mxu0 }
 0x5ad   :  { %v1054_v30 = vpop.f32.mrb[4].mxu1 }
 0x5ae   :  { %v1127_v9 = vadd.f32 %v1126_v23, %v1054_v30  ;;  %v3142_v18 = vpop.f32.mrb[5].mxu1  ;;  %v1772_v30 = vld [vmem:[%s4704_s3] sm:$0x3f] }
 0x5b0   :  { %v1131_v48 = vadd.f32 %v1130_v37, %v1127_v9  ;;  %v1221_v37 = vld [vmem:[%s4713_s12] sm:$0x1] }
 0x5b2   :  { %v1132_v38 = vmax.f32 %v1131_v48, 0.0 }
 0x5b4   :  { %3167 = vmatmul.mubr.msk.f32.vlgmr.msra.gmra.mrb[6].mxu1 %vm1138_vm13, %v1132_v38 }
 0x5b5   :  { %3598 = vmatpush3.bf16.msra.mxu1 %v3911_v3  ;;  %3204 = vmatprep.mubr.msk.f32.mxu1 %vm72_vm1, %v1318_v4  ;;  %v1485_v3 = vrot.slane %v4448_v56, 2 }
 0x5b6   :  { %3600 = vmatprep.subr.bf16.mxu1 %v3916_v5 }
 0x5b9   :  { %3602 = vmatpush3.bf16.msra.mxu1 %v3916_v5  ;;  %v1486_v5 = vrot.slane %v4453_v62, 2 }
 0x5ba   :  { %3604 = vmatprep.subr.bf16.mxu1 %v3939_v12 }
 0x5bd   :  { %3606 = vmatpush3.bf16.msra.mxu1 %v3939_v12  ;;  %v1487_v12 = vsel %vm240_vm2, %v1485_v3, %v1486_v5 }
 0x5be   :  { %3608 = vmatprep.subr.bf16.mxu1 %v3951_v16 }
 0x5c1   :  { %3610 = vmatpush3.bf16.msra.mxu1 %v3951_v16  ;;  %v1577_v16 = vrot.slane %v4448_v56, 3 }
 0x5c2   :  { %3612 = vmatprep.subr.bf16.mxu1 %v3961_v19 }
 0x5c4   :  { %3205 = vmatmul.mubr.msk.f32.vlgmr.msra.gmra.mrb[8].mxu1 %vm72_vm1, %v1317_v44 }
 0x5c5   :  { %3614 = vmatpush3.bf16.msra.mxu1 %v3961_v19  ;;  %3223 = vmatprep.mubr.msk.f32.mxu1 %vm72_vm1, %v4448_v56  ;;  %v1578_v19 = vrot.slane %v4453_v62, 3 }
 0x5c6   :  { %3616 = vmatprep.subr.bf16.mxu1 %v3971_v22 }
 0x5c9   :  { %3618 = vmatpush3.bf16.msra.mxu1 %v3971_v22  ;;  %v1579_v22 = vsel %vm334_vm3, %v1577_v16, %v1578_v19 }
 0x5ca   :  { %3620 = vmatprep.subr.bf16.mxu1 %v3984_v25 }
 0x5cd   :  { %3622 = vmatpush3.bf16.msra.mxu1 %v3984_v25  ;;  %v4726_v25 = vmov 0.0  }
 0x5ce   :  { %3624 = vmatprep.subr.bf16.mxu1 %v3994_v28 }
 0x5d1   :  { %3626 = vmatpush3.bf16.msra.mxu1 %v3994_v28  ;;  %v4727_v28 = vrot.slane %v4453_v62, 4 }
 0x5d2   :  { %3628 = vmatprep.subr.bf16.mxu1 %v4004_v31 }
 0x5d4   :  { %3224 = vmatmul.mubr.msk.f32.vlgmr.msra.gmra.mrb[8].mxu1 %vm72_vm1, %v4453_v62 }
 0x5d5   :  { %3630 = vmatpush3.bf16.msra.mxu1 %v4004_v31  ;;  %3242 = vmatprep.mubr.msk.f32.mxu1 %vm72_vm1, %v1487_v12  ;;  %v1219_v31 = vld [vmem:[%s4712_s11 + $0x30] sm:$0xff] }
 0x5d6   :  { %3632 = vmatprep.subr.bf16.mxu1 %v4016_v36 }
 0x5d9   :  { %3634 = vmatpush3.bf16.msra.mxu1 %v4016_v36  ;;  %v1220_v36 = vld [vmem:[%s4712_s11 + $0x38] sm:$0xff] }
 0x5da   :  { %3636 = vmatprep.subr.bf16.mxu1 %v4030_v40 }
 0x5dd   :  { %3638 = vmatpush3.bf16.msra.mxu1 %v4030_v40  ;;  %v4568_v40 = vpack.c.bf16 %v1220_v36, %v1219_v31 }
 0x5de   :  { %3640 = vmatprep.subr.bf16.mxu1 %v4040_v43 }
 0x5df   :  { %3594 = vmatpush3.bf16.msra.mxu0 %v4568_v40 }
 0x5e0   :  { %3675 = vmatprep.subr.bf16.mxu0 %v3825_v15 }
 0x5e1   :  { %3642 = vmatpush3.bf16.msra.mxu1 %v4040_v43  ;;  %v1137_v43 = vld [vmem:[%s4711_s10] sm:$0x1] }
 0x5e2   :  { %3644 = vmatprep.subr.bf16.mxu1 %v4050_v46 }
 0x5e4   :  { %3243 = vmatmul.mubr.msk.f32.vlgmr.msra.gmra.mrb[8].mxu1 %vm72_vm1, %v1486_v5 }
 0x5e5   :  { %3646 = vmatpush3.bf16.msra.mxu1 %v4050_v46  ;;  %3261 = vmatprep.mubr.msk.f32.mxu1 %vm72_vm1, %v1579_v22 }
 0x5e6   :  { %3648 = vmatprep.subr.bf16.mxu1 %v4062_v51 }
 0x5e9   :  { %3650 = vmatpush3.bf16.msra.mxu1 %v4062_v51 }
 0x5ea   :  { %3652 = vmatprep.subr.bf16.mxu1 %v4075_v55 }
 0x5ed   :  { %3654 = vmatpush3.bf16.msra.mxu1 %v4075_v55 }
 0x5ee   :  { %3656 = vmatprep.subr.bf16.mxu1 %v4085_v58 }
 0x5f1   :  { %3658 = vmatpush3.bf16.msra.mxu1 %v4085_v58 }
 0x5f2   :  { %3660 = vmatprep.subr.bf16.mxu1 %v4095_v61 }
 0x5f4   :  { %3262 = vmatmul.mubr.msk.f32.vlgmr.msra.gmra.mrb[8].mxu1 %vm72_vm1, %v1578_v19 }
 0x5f5   :  { %3662 = vmatpush3.bf16.msra.mxu1 %v4095_v61  ;;  %3280 = vmatprep.mubr.msk.f32.mxu1 %vm72_vm1, %v4460_v20 }
 0x5f6   :  { %3664 = vmatprep.subr.bf16.mxu1 %v4107_v2 }
 0x5f9   :  { %3666 = vmatpush3.bf16.msra.mxu1 %v4107_v2 }
 0x5fa   :  { %3668 = vmatprep.subr.bf16.mxu1 %v4120_v8 }
 0x5fd   :  { %3670 = vmatpush3.bf16.msra.mxu1 %v4120_v8 }
 0x5fe   :  { %3672 = vmatprep.subr.bf16.mxu1 %v4130_v11 }
 0x601   :  { %3674 = vmatpush3.bf16.msra.mxu1 %v4130_v11 }
 0x602   :  { %3365 = vmatprep.subr.mxu1 %v4726_v25 }
 0x604   :  { %3281 = vmatmul.mubr.msk.f32.vlgmr.msra.gmra.mrb[8].mxu1 %vm72_vm1, %v4727_v28 }
 0x605   :  { %3367 = vmatprep.mubr.msk.f32.mxu1 %vm3826_vm5, %v4726_v25 }
 0x687   :  { %v1208_v46 = vpop.f32.mrb[6].mxu1 }
 0x688   :  { %v1209_v51 = vadd.f32 %v1208_v46, %v1137_v43  ;;  %v3168_v55 = vpop.f32.mrb[7].mxu1 }
 0x68a   :  { %v1212_v58 = vmax.f32 %v1209_v51, 0.0 }
 0x68c   :  { %3186 = vmatmul.mubr.msk.f32.vlgmr.msra.gmra.mrb[6].mxu0 %vm72_vm1, %v1212_v58 }
 0x68d   :  { %3287 = vmatprep.mubr.msk.f32.mxu0 %vm3826_vm5, %v4726_v25 }
 0x6d7   :  { %v3282_v61 = vpop.f32.mrb[8].mxu1 }
 0x6d8   :  { %v1742_v2 = vpop.f32.mrb[9].mxu1 }
 0x6d9   :  { %v3796_v8 = vpack.i.bf16 %v3282_v61, %v1742_v2 }
 0x6db   :  { %3797 = vrot.lane.b32.xlu1 %v3796_v8, %s3828_s1 }
 0x74d   :  { %v3798_v11 = vpop.permute.xlu1 %3797 }
 0x74e   :  { %v3800_v18 = vunpack.i.h.bf16 %v3798_v11  ;;  %v3799_v52 = vunpack.i.l.bf16 %v3798_v11 }
 0x750   :  { %v1762_v56 = vmax.f32 %v3282_v61, %v3800_v18  ;;  %v1761_v62 = vmax.f32 %v1742_v2, %v3799_v52 }
 0x752   :  { %v1766_v9 = vrot.slane %v1762_v56, 1  ;;  %v1765_v20 = vrot.slane %v1761_v62, 1 }
 0x754   :  { %v1771_v38 = vmax.f32 %v1762_v56, %v1766_v9  ;;  %v1767_v4 = vsel %vm68_vm0, %v1765_v20, %v1766_v9 }
 0x755   :  { %v1770_v23 = vmax.f32 %v1761_v62, %v1767_v4 }
 0x757   :  { %v3676_v26 = vpack.c.bf16 %v1771_v38, %v1770_v23 }
 0x759   :  { %3678 = vmatpush3.bf16.msk.msra.mxu0 %vm4185_vm8, %v3676_v26 }
 0x75a   :  { %3679 = vmatprep.subr.bf16.mxu0 %v3825_v15 }
 0x75c   :  { %3288 = vmatmul.mubr.msk.f32.vlgmr.msra.gmra.mrb[8].mxu0 %vm540_vm9, %v1772_v30 }
 0x75d   :  { %3681 = vmatpush3.bf16.msra.mxu0 %v4152_v24  ;;  %3312 = vmatprep.mubr.msk.f32.mxu0 %vm3826_vm5, %v4726_v25 }
 0x75e   :  { %3682 = vmatprep.subr.bf16.mxu0 %v3825_v15 }
 0x75f   :  { %v1291_v50 = vpop.f32.mrb[6].mxu0 }
 0x760   :  { %v1292_v44 = vadd.f32 %v1291_v50, %v1221_v37  ;;  %v3187_v48 = vpop.f32.mrb[7].mxu0 }
 0x761   :  { %3684 = vmatpush3.bf16.msra.mxu0 %v4158_v27 }
 0x762   :  { %v1295_v3 = vmax.f32 %v1292_v44, 0.0  ;;  %3685 = vmatprep.subr.bf16.mxu0 %v3825_v15 }
 0x764   :  { %1297 = vst.msk [vmem:[#allocation2] sm:$0x1] %vm1296_vm14, %v1295_v3 }
 0x765   :  { %3687 = vmatpush3.bf16.msra.mxu0 %v4168_v32 }
 0x766   :  { %3688 = vmatprep.subr.bf16.mxu0 %v3825_v15 }
 0x769   :  { %3690 = vmatpush3.bf16.msra.mxu0 %v4178_v35 }
 0x76a   :  { %3691 = vmatprep.subr.bf16.mxu0 %v3825_v15 }
 0x76d   :  { %3693 = vmatpush3.bf16.msra.mxu0 %v4204_v57 }
 0x76e   :  { %3310 = vmatprep.subr.mxu0 %v4726_v25 }
 0x771   :  { %3311 = vmatpush3.msra.mxu0 %v4211_v59 }
 0x772   :  { %3694 = vmatprep.subr.bf16.mxu0 %v3825_v15 }
 0x82f   :  { %v1852_v24 = vpop.f32.mrb[8].mxu0 }
 0x830   :  { %v1853_v27 = vadd.f32 %v4218_v60, %v1852_v24  ;;  %v3289_v5 = vpop.f32.mrb[9].mxu0 }
 0x832   :  { %v1856_v12 = vmax.f32 %v1853_v27, 0.0 }
 0x834   :  { %v1880_v32 = vrot.slane %v1856_v12, 1  ;;  %v2036_v35 = vrot.slane %v1856_v12, 2 }
 0x836   :  { %3313 = vmatmul.mubr.msk.f32.vlgmr.msra.gmra.mrb[10].mxu0 %vm644_vm10, %v1880_v32 }
 0x837   :  { %3696 = vmatpush3.bf16.msra.mxu0 %v4227_v7  ;;  %3337 = vmatprep.mubr.msk.f32.mxu0 %vm3826_vm5, %v4726_v25 }
 0x838   :  { %3697 = vmatprep.subr.bf16.mxu0 %v3825_v15 }
 0x83b   :  { %3699 = vmatpush3.bf16.msra.mxu0 %v4237_v14 }
 0x83c   :  { %3700 = vmatprep.subr.bf16.mxu0 %v3825_v15 }
 0x83f   :  { %3702 = vmatpush3.bf16.msra.mxu0 %v4249_v21 }
 0x840   :  { %3703 = vmatprep.subr.bf16.mxu0 %v3825_v15 }
 0x843   :  { %3705 = vmatpush3.bf16.msra.mxu0 %v4259_v29  ;;  %v2119_v29 = vld [vmem:[%s4707_s6] sm:$0x3] }
 0x844   :  { %3706 = vmatprep.subr.bf16.mxu0 %v3825_v15 }
 0x847   :  { %3708 = vmatpush3.bf16.msra.mxu0 %v4269_v34 }
 0x848   :  { %3335 = vmatprep.subr.mxu0 %v4726_v25 }
 0x84b   :  { %3336 = vmatpush3.msra.mxu0 %v4283_v39 }
 0x84c   :  { %3338 = vmatmul.mubr.msk.f32.vlgmr.msra.gmra.mrb[10].mxu0 %vm644_vm10, %v1856_v12  ;;  %3709 = vmatprep.subr.bf16.mxu0 %v3825_v15 }
 0x84d   :  { %3711 = vmatpush3.bf16.msra.mxu0 %v4285_v41  ;;  %3362 = vmatprep.mubr.msk.f32.mxu0 %vm3826_vm5, %v4726_v25 }
 0x84e   :  { %3712 = vmatprep.subr.bf16.mxu0 %v3825_v15 }
 0x851   :  { %3714 = vmatpush3.bf16.msra.mxu0 %v4297_v45 }
 0x852   :  { %3715 = vmatprep.subr.bf16.mxu0 %v3825_v15 }
 0x855   :  { %3717 = vmatpush3.bf16.msra.mxu0 %v4309_v49 }
 0x856   :  { %3718 = vmatprep.subr.bf16.mxu0 %v3825_v15 }
 0x859   :  { %3720 = vmatpush3.bf16.msra.mxu0 %v4319_v54  ;;  %v4728_v54 = vld [vmem:[#allocation6_spill] sm:$0xff] }
 0x85a   :  { %3721 = vmatprep.subr.bf16.mxu0 %v3825_v15 }
 0x85d   :  { %3723 = vmatpush3.bf16.msra.mxu0 %v4329_v63  ;;  %v4729_v63 = vld [vmem:[#allocation5_spill] sm:$0xff] }
 0x85e   :  { %3360 = vmatprep.subr.mxu0 %v4726_v25 }
 0x861   :  { %3361 = vmatpush3.msra.mxu0 %v4337_v0  ;;  %v4730_v0 = vld [vmem:[#allocation7_spill] sm:$0xff] }
 0x862   :  { %3363 = vmatmul.mubr.msk.f32.vlgmr.msra.gmra.mrb[10].mxu0 %vm644_vm10, %v2036_v35  ;;  %3724 = vmatprep.subr.bf16.mxu0 %v3825_v15 }
 0x863   :  { %3726 = vmatpush3.bf16.msra.mxu0 %v4374_v47  ;;  %3382 = vmatprep.mubr.msk.f32.mxu0 %vm3826_vm5, %v4726_v25 }
 0x864   :  { %3727 = vmatprep.subr.bf16.mxu0 %v3825_v15 }
 0x867   :  { %3729 = vmatpush3.bf16.msra.mxu0 %v4389_v53  ;;  %v2362_v53 = vld [vmem:[%s4709_s8] sm:$0x1]  ;;  %s3831_s8 = smov [#allocation2]  }
 0x868   :  { %3730 = vmatprep.subr.bf16.mxu0 %v3825_v15  ;;  %s2534_s0 = sshll.u32 %s3831_s8, 4  ;;  %s2535_s0 = int_to_ptr.vmem [resolvable:$true] %s2534_s0 }
 0x869   :  { %p3806_p1 = scmp.lt.s32.totalorder %s2535_s0, %s2535_s0 }
 0x86b   :  { %3732 = vmatpush3.bf16.msra.mxu0 %v4408_v6 }
 0x86c   :  { %3742 = vmatprep.subr.bf16.mxu0 %v3825_v15 }
 0x935   :  { %v2105_v57 = vpop.f32.mrb[10].mxu0 }
 0x936   :  { %2111 = vrot.lane.b32.xlu1 %v2105_v57, %s3830_s30  ;;  %v3364_v59 = vpop.f32.mrb[11].mxu0 }
 0x9a8   :  { %v2112_v60 = vpop.permute.xlu1 %2111 }
 0x9a9   :  { %v2114_v7 = vmax.f32 %v2105_v57, %v2112_v60 }
 0x9ab   :  { %v2116_v14 = vrot.slane %v2114_v7, 1 }
 0x9ad   :  { %v2118_v21 = vmax.f32 %v2114_v7, %v2116_v14 }
 0x9af   :  { %3366 = vmatpush3.msk.msra.mxu1 %vm544_vm6, %v2118_v21 }
 0x9b0   :  { %3368 = vmatmul.mubr.msk.f32.vlgmr.msra.gmra.mrb[10].mxu1 %vm892_vm11, %v2119_v29  ;;  %3733 = vmatprep.subr.bf16.mxu1 %v3825_v15 }
 0x9b1   :  { %3735 = vmatpush3.bf16.msra.mxu1 %v4350_v10  ;;  %3397 = vmatprep.mubr.msk.f32.mxu1 %vm3826_vm5, %v4726_v25 }
 0x9b2   :  { %3736 = vmatprep.subr.bf16.mxu1 %v3825_v15 }
 0x9b5   :  { %3738 = vmatpush3.bf16.msra.mxu1 %v4359_v17 }
 0x9b6   :  { %3739 = vmatprep.subr.bf16.mxu1 %v3825_v15 }
 0x9b9   :  { %3741 = vmatpush3.bf16.msra.mxu1 %v4398_v1 }
 0x9ba   :  { %3748 = vmatprep.subr.bf16.mxu1 %v3825_v15 }
 0xa83   :  { %v2199_v34 = vpop.f32.mrb[10].mxu1 }
 0xa84   :  { %v2200_v39 = vadd.f32 %v4416_v13, %v2199_v34  ;;  %v3369_v41 = vpop.f32.mrb[11].mxu1 }
 0xa86   :  { %v2203_v45 = vmax.f32 %v2200_v39, 0.0 }
 0xa88   :  { %v2217_v49 = vrot.slane %v2203_v45, 1  ;;  %3398 = vmatmul.mubr.msk.f32.vlgmr.msra.gmra.mrb[12].mxu1 %vm985_vm12, %v2203_v45 }
 0xa89   :  { %3750 = vmatpush3.bf16.msra.mxu1 %v4471_v33  ;;  %3427 = vmatprep.mubr.msk.f32.mxu1 %vm3826_vm5, %v4726_v25  ;;  %v2369_v33 = vld [vmem:[%s4711_s10] sm:$0x1]  ;;  %s3801_s10 = scalar_lea.vmem %s2535_s0, 32 }
 0xa8a   :  { %3383 = vmatmul.mubr.msk.f32.vlgmr.msra.gmra.mrb[12].mxu0 %vm985_vm12, %v2217_v49  ;;  %3751 = vmatprep.subr.bf16.mxu1 %v3825_v15  ;;  %p3802_p0 = scmp.ne.s32.totalorder %s2535_s0, %s3801_s10  ;;  %p3807_p2 = scmp.lt.s32.totalorder %s3801_s10, %s3801_s10 }
 0xa8b   :  { %3744 = vmatpush3.bf16.msra.mxu0 %v4431_v42  ;;  %3408 = vmatprep.mubr.msk.f32.mxu0 %vm3826_vm5, %v4726_v25  ;;  %v2452_v25 = vld [vmem:[%s4713_s12] sm:$0x1] }
 0xa8c   :  { %3745 = vmatprep.subr.bf16.mxu0 %v3825_v15  ;;  %p3808_p3 = por %p3807_p2, %p3806_p1 }
 0xa8d   :  { %3753 = vmatpush3.bf16.msra.mxu1 %v4728_v54 }
 0xa8e   :  { %3754 = vmatprep.subr.bf16.mxu1 %v3825_v15  ;;  %p3809_p4 = pnand %p3808_p3, %p3802_p0 }
 0xa8f   :  { %3747 = vmatpush3.bf16.msra.mxu0 %v4729_v63 }
 0xa91   :  { %3756 = vmatpush3.bf16.msra.mxu1 %v4730_v0 }
 0xa92   :  { %3757 = vmatprep.subr.bf16.mxu1 %v3825_v15 }
 0xa95   :  { %3759 = vmatpush3.bf16.msra.mxu1 %v4568_v40 }
 0xb5b   :  { %v2358_v10 = vpop.f32.mrb[12].mxu1 }
 0xb5c   :  { %v3399_v17 = vpop.f32.mrb[13].mxu1 }
 0xb5d   :  { %v2286_v47 = vpop.f32.mrb[12].mxu0 }
 0xb5e   :  { %v2359_v1 = vadd.f32 %v2358_v10, %v2286_v47  ;;  %v3384_v6 = vpop.f32.mrb[13].mxu0 }
 0xb60   :  { %v2363_v13 = vadd.f32 %v2362_v53, %v2359_v1 }
 0xb62   :  { %v2364_v42 = vmax.f32 %v2363_v13, 0.0 }
 0xb64   :  { %3409 = vmatmul.mubr.msk.f32.vlgmr.msra.gmra.mrb[14].mxu0 %vm1138_vm13, %v2364_v42 }
 0xc37   :  { %v2439_v15 = vpop.f32.mrb[14].mxu0 }
 0xc38   :  { %v2440_v16 = vadd.f32 %v2439_v15, %v2369_v33  ;;  %v3410_v19 = vpop.f32.mrb[15].mxu0 }
 0xc3a   :  { %v2443_v22 = vmax.f32 %v2440_v16, 0.0 }
 0xc3c   :  { %3428 = vmatmul.mubr.msk.f32.vlgmr.msra.gmra.mrb[14].mxu1 %vm72_vm1, %v2443_v22 }
 0xd0f   :  { %v2522_v28 = vpop.f32.mrb[14].mxu1 }
 0xd10   :  { %v2523_v31 = vadd.f32 %v2522_v28, %v2452_v25  ;;  %v3429_v36 = vpop.f32.mrb[15].mxu1 }
 0xd12   :  { %v2526_v40 = vmax.f32 %v2523_v31, 0.0 }
 0xd14   :  { %2527 = vst.msk [vmem:[#allocation2 + $0x1] sm:$0x1] %vm1296_vm14, %v2526_v40 }
 0xd15   :  { %3812 = shalt.err (!%p3809_p4)
}
 0xd16   :  { %s3813_s12 = scalar_lea.hbm %s4714_s13, 32 }
 0xd17   :  { %p3814_p5 = scmp.ne.s32.totalorder %s4714_s13, %s3813_s12  ;;  %p3817_p6 = scmp.lt.u32.totalorder %s3813_s12, %s4714_s13 }
 0xd19   :  { %p3819_p7 = pnand %p3817_p6, %p3814_p5 }
 0xd1b   :  { %3822 = shalt.err (!%p3819_p7)
}
 0xd1c   :  { %2537 = dma.vmem_to_hbm [thread:$0]  %s2535_s0, 32, %s4714_s13, [#allocation3]  }
 0xd1d   :  { %3823 = dma.done.wait [#allocation3], 32  }
 0xd1e   :  { %3824 = vsyncadd [#allocation3], 4294967264 }
 0xd1f   :  { %2541 = vsyncpa [#allocation3], 1 }

</bundles_post_ra>
